<compile_context>
chip_gen: v7x
topology: tpu7x:2x2x1
jax: 0.10.0
libtpu: 0.0.40
codegen_flags: <defaults>
</compile_context>

<pallas_src>
import math
from functools import partial

import jax
import jax.numpy as jnp
import numpy as np
from jax.experimental import pallas as pl
from jax.experimental.pallas import tpu as pltpu


# --------------------------------------------------------------------------- #
# Kernel
# --------------------------------------------------------------------------- #
def _attn_kernel(z_ref, wqs_ref, bs_ref, wvo_ref, bo_ref, o_ref, *,
                 nheads, num_tokens):
    """Channel-major attention on one (E, TL) lane tile.

    z_ref  : (E, TL)   queries, channel-major (E = token_dim, TL = lane tile)
    wqs_ref: (H*N, E)  fused (scaled block-diag K^T) @ Wq^T       (compute dtype)
    bs_ref : (H*N, 1)  fused score bias (block-diag K^T @ bq)     (f32)
    wvo_ref: (E, H*N)  fused Wo^T @ (block-diag V^T)              (compute dtype)
    bo_ref : (E, 1)    output-projection bias                     (f32)
    o_ref  : (E, TL)   attention output, channel-major            (f32)
    """
    cdt = wqs_ref.dtype
    z = z_ref[...].astype(cdt)                                # (E, TL)

    # Fused Q-projection + per-head scaled scores: one MXU matmul, f32 accum.
    s = jnp.dot(wqs_ref[...], z, preferred_element_type=jnp.float32)
    s = s + bs_ref[...]                                       # (H*N, TL) f32

    # Per-head softmax over the codebook axis.  (H*N,TL)->(H,N,TL) is a free
    # leading-dim split (N % 8 == 0); reductions run on the sublane axis.
    tl = s.shape[-1]
    s3 = s.reshape(nheads, num_tokens, tl)
    m = jnp.max(s3, axis=1, keepdims=True)                    # (H, 1, TL)
    p = jnp.exp(s3 - m)
    l = jnp.sum(p, axis=1, keepdims=True)                     # (H, 1, TL)
    p = p * pl.reciprocal(l, approx=True)                     # EUP reciprocal
    pT = p.reshape(nheads * num_tokens, tl).astype(cdt)       # (H*N, TL)

    # Fused value aggregation + output projection: one MXU matmul, f32 accum.
    out = jnp.dot(wvo_ref[...], pT, preferred_element_type=jnp.float32)
    o_ref[...] = (out + bo_ref[...]).astype(o_ref.dtype)


# --------------------------------------------------------------------------- #
# Spec / tiling helpers
# --------------------------------------------------------------------------- #
def _invariant_spec(block_shape, index_map):
    """BlockSpec for a batch-invariant operand (constant index map).

    Single-buffering halves its VMEM footprint (matters on v7x's 64 MiB VMEM
    at production sizes); falls back to a plain BlockSpec if the installed
    JAX does not expose pipeline_mode / Buffered.
    """
    if hasattr(pl, "Buffered"):
        try:
            return pl.BlockSpec(block_shape, index_map,
                                pipeline_mode=pl.Buffered(1))
        except TypeError:
            pass
    return pl.BlockSpec(block_shape, index_map)


def _pick_lane_tile(total_lanes, *, preferred=512, min_steps=1):
    """Largest multiple of 128 dividing total_lanes, <= preferred, leaving at
    least min_steps lane tiles (128 is always a valid fallback)."""
    assert total_lanes % 128 == 0
    best = 128
    for t in range(128, min(total_lanes, preferred) + 1, 128):
        if total_lanes % t == 0 and total_lanes // t >= min_steps:
            best = t
    return best


def _block_vmem_bytes(rows, cols, dtype):
    r = ((rows + 7) // 8) * 8
    c = ((cols + 127) // 128) * 128
    return r * c * np.dtype(dtype).itemsize


# --------------------------------------------------------------------------- #
# Batch-invariant precompute (run ONCE at weight-load time)
# --------------------------------------------------------------------------- #
def prepare_fused_params(params, *, nheads, compute_dtype=jnp.bfloat16):
    """Build the fused, batch-invariant matmul operands used by the kernel.

    All fusion / the 1/sqrt(hd) scaling is done in f32; only the final matmul
    operands are cast to `compute_dtype` (bf16 by default for the v6e/v7x MXU).
    Biases stay f32 (added after the f32 accumulation).
    """
    cb = params["codebook"].astype(jnp.float32)
    N, E = cb.shape
    assert E % nheads == 0, "token_dim must be divisible by nheads"
    assert N % 8 == 0, "num_tokens must be a multiple of 8 (sublane alignment)"
    assert E % 8 == 0, "token_dim must be a multiple of 8 (sublane alignment)"
    hd = E // nheads
    HN = nheads * N
    scale = 1.0 / math.sqrt(hd)

    k = cb @ params["wk"] + params["bk"]              # (N, E)
    v = cb @ params["wv"] + params["bv"]              # (N, E)

    kbdT = jnp.zeros((HN, E), jnp.float32)            # block-diag per-head K, pre-scaled
    vbdT = jnp.zeros((E, HN), jnp.float32)            # block-diag per-head V^T
    for h in range(nheads):
        kh = k[:, h * hd:(h + 1) * hd]                # (N, hd)
        vh = v[:, h * hd:(h + 1) * hd]                # (N, hd)
        kbdT = kbdT.at[h * N:(h + 1) * N, h * hd:(h + 1) * hd].set(kh * scale)
        vbdT = vbdT.at[h * hd:(h + 1) * hd, h * N:(h + 1) * N].set(vh.T)

    wqs = kbdT @ params["wq"].T                       # (HN, E)
    bs = kbdT @ params["bq"].reshape(E, 1)            # (HN, 1)
    wvo = params["wo"].T @ vbdT                       # (E, HN)
    bo = params["bo"].reshape(E, 1)                   # (E, 1)

    return dict(wqs=wqs.astype(compute_dtype), bs=bs.astype(jnp.float32),
                wvo=wvo.astype(compute_dtype), bo=bo.astype(jnp.float32))


# --------------------------------------------------------------------------- #
# Forward wrapper
# --------------------------------------------------------------------------- #
def attention_quantizer_forward(x_nchw, fused, *, nheads, lane_tile=512):
    """x_nchw: (B, C, H, W) with C == token_dim; fused = prepare_fused_params()."""
    b, c, hh, ww = x_nchw.shape
    wqs, bs, wvo, bo = fused["wqs"], fused["bs"], fused["wvo"], fused["bo"]
    HN, E = wqs.shape
    N = HN // nheads
    assert c == E, (c, E)
    L = hh * ww

    fold_batch = (L % 128 != 0)
    if not fold_batch:
        # NCHW is already channel-major: (B,C,H,W) -> (B*E, L) is a free reshape.
        z2 = x_nchw.reshape(b * E, L)
        TL = _pick_lane_tile(L, preferred=lane_tile,
                             min_steps=1 if b >= 2 else 2)
        grid = (b, L // TL)
        blk_idx = lambda i, j: (i, j)
        const_idx = lambda i, j: (0, 0)
    else:
        # Tiny spatial extent: fold the batch onto the lane axis (one wrapper
        # transpose, plus padding to a multiple of 128 if needed) so kernel
        # blocks stay >= 128 lanes wide (unmasked stores, full vregs).
        BL = b * L
        z2 = jnp.transpose(x_nchw.reshape(b, E, L), (1, 0, 2)).reshape(E, BL)
        BLp = ((BL + 127) // 128) * 128
        if BLp != BL:
            z2 = jnp.pad(z2, ((0, 0), (0, BLp - BL)))
        TL = _pick_lane_tile(BLp, preferred=lane_tile, min_steps=2)
        grid = (BLp // TL,)
        blk_idx = lambda j: (0, j)
        const_idx = lambda j: (0, 0)

    kernel = partial(_attn_kernel, nheads=nheads, num_tokens=N)

    # VMEM budget: z/out double-buffered, invariant weights single-buffered.
    # Raises the scoped default where needed (v5e: 16 MiB) without exceeding
    # the smallest physical VMEM (v7x: 64 MiB).
    est = (2 * _block_vmem_bytes(E, TL, z2.dtype)
           + 2 * _block_vmem_bytes(E, TL, jnp.float32)
           + _block_vmem_bytes(HN, E, wqs.dtype)
           + _block_vmem_bytes(HN, 1, bs.dtype)
           + _block_vmem_bytes(E, HN, wvo.dtype)
           + _block_vmem_bytes(E, 1, bo.dtype))
    vmem_limit = int(min(64 * 2**20, max(32 * 2**20, 2 * est)))

    out2 = pl.pallas_call(
        kernel,
        out_shape=jax.ShapeDtypeStruct(z2.shape, jnp.float32),
        grid_spec=pltpu.PrefetchScalarGridSpec(
            num_scalar_prefetch=0,
            grid=grid,
            in_specs=[
                pl.BlockSpec((E, TL), blk_idx),        # z (per batch / lane tile)
                _invariant_spec((HN, E), const_idx),   # wqs  (batch-invariant)
                _invariant_spec((HN, 1), const_idx),   # bs
                _invariant_spec((E, HN), const_idx),   # wvo
                _invariant_spec((E, 1), const_idx),    # bo
            ],
            out_specs=pl.BlockSpec((E, TL), blk_idx),
        ),
        compiler_params=pltpu.CompilerParams(
            dimension_semantics=("parallel",) * len(grid),
            vmem_limit_bytes=vmem_limit,
        ),
    )(z2, wqs, bs, wvo, bo)

    if not fold_batch:
        return out2.reshape(b, c, hh, ww)
    out2 = out2[:, :b * L]                             # drop lane padding
    return out2.reshape(E, b, L).transpose(1, 0, 2).reshape(b, c, hh, ww)


# --------------------------------------------------------------------------- #
# Synthetic parameters + pure-JAX reference (module-equivalent semantics)
# --------------------------------------------------------------------------- #
def make_params(key, num_tokens, token_dim):
    """Deterministic synthetic parameters mirroring the PyTorch module shapes."""
    E = token_dim
    ks = jax.random.split(key, 6)
    codebook = jax.random.uniform(
        ks[0], (num_tokens, E), jnp.float32,
        minval=-1.0 / num_tokens, maxval=1.0 / num_tokens)
    lim_in = math.sqrt(6.0 / (E + 3 * E))
    in_proj_w = jax.random.uniform(ks[1], (3 * E, E), jnp.float32, -lim_in, lim_in)
    in_proj_b = jax.random.uniform(ks[2], (3 * E,), jnp.float32, -0.05, 0.05)
    lim_out = math.sqrt(6.0 / (E + E))
    out_proj_w = jax.random.uniform(ks[3], (E, E), jnp.float32, -lim_out, lim_out)
    out_proj_b = jax.random.uniform(ks[4], (E,), jnp.float32, -0.05, 0.05)

    # Pre-transpose to "x @ W" form used by the math.
    wq = in_proj_w[0 * E:1 * E].T
    wk = in_proj_w[1 * E:2 * E].T
    wv = in_proj_w[2 * E:3 * E].T
    wo = out_proj_w.T
    return dict(
        codebook=codebook,
        wq=wq, wk=wk, wv=wv, wo=wo,
        bq=in_proj_b[0 * E:1 * E].reshape(1, E),
        bk=in_proj_b[1 * E:2 * E].reshape(1, E),
        bv=in_proj_b[2 * E:3 * E].reshape(1, E),
        bo=out_proj_b.reshape(1, E),
    )


def reference_forward(x_nchw, params, *, nheads):
    """Pure-JAX reference with identical semantics (no Pallas, no fusion)."""
    b, c, h, w = x_nchw.shape
    E = c
    L = h * w
    hd = E // nheads
    cb = params["codebook"]
    N = cb.shape[0]

    z = jnp.transpose(x_nchw, (0, 2, 3, 1)).reshape(b, L, E)
    q = z @ params["wq"] + params["bq"]                       # (b, L, E)
    k = cb @ params["wk"] + params["bk"]                      # (N, E)
    v = cb @ params["wv"] + params["bv"]                      # (N, E)

    qh = q.reshape(b, L, nheads, hd).transpose(0, 2, 1, 3)    # (b, H, L, hd)
    kh = k.reshape(N, nheads, hd).transpose(1, 0, 2)          # (H, N, hd)
    vh = v.reshape(N, nheads, hd).transpose(1, 0, 2)          # (H, N, hd)

    s = jnp.einsum("bhld,hnd->bhln", qh, kh) / math.sqrt(hd)
    p = jax.nn.softmax(s, axis=-1)
    o = jnp.einsum("bhln,hnd->bhld", p, vh)                   # (b, H, L, hd)
    o = o.transpose(0, 2, 1, 3).reshape(b, L, E)
    o = o @ params["wo"] + params["bo"]
    return jnp.transpose(o, (0, 2, 1)).reshape(b, c, h, w)


# --------------------------------------------------------------------------- #
# Demo / correctness check
# --------------------------------------------------------------------------- #
if __name__ == "__main__":
    batch = 2
    token_dim = 32          # == channels C
    height = width = 16     # L = H*W = 256 -> lane-dense blocks without folding
    num_tokens = 64
    nheads = 4

    key = jax.random.PRNGKey(0)
    k_x, k_p = jax.random.split(key)
    x = jax.random.normal(k_x, (batch, token_dim, height, width), jnp.float32)
    params = make_params(k_p, num_tokens, token_dim)

    # Batch-invariant fused weights: computed once, outside the per-call path.
    fused = prepare_fused_params(params, nheads=nheads,
                                 compute_dtype=jnp.bfloat16)

    fwd = jax.jit(partial(attention_quantizer_forward, nheads=nheads))
    out = jax.block_until_ready(fwd(x, fused))

    ref = jax.block_until_ready(reference_forward(x, params, nheads=nheads))
    assert out.shape == x.shape, (out.shape, x.shape)
    # Tolerance covers bf16 matmul operands (f32 accumulation, f32 softmax)
    # and the approximate EUP reciprocal in the softmax denominator.
    np.testing.assert_allclose(np.asarray(out), np.asarray(ref),
                               rtol=5e-3, atol=5e-3)
    print("KERNEL_OK")
</pallas_src>

<mosaic_0001>
module attributes {stable_mosaic.version = 11 : i64} {
  func.func @_attn_kernel(%arg0: i32, %arg1: i32, %arg2: memref<32x256xf32, #tpu.memory_space<vmem>>, %arg3: memref<256x32xbf16, #tpu.memory_space<vmem>>, %arg4: memref<256x1xf32, #tpu.memory_space<vmem>>, %arg5: memref<32x256xbf16, #tpu.memory_space<vmem>>, %arg6: memref<32x1xf32, #tpu.memory_space<vmem>>, %arg7: memref<32x256xf32, #tpu.memory_space<vmem>>) attributes {dimension_semantics = [#tpu.dimension_semantics<parallel>, #tpu.dimension_semantics<parallel>], iteration_bounds = array<i64: 2, 1>, scalar_prefetch = 0 : i64, scratch_operands = 0 : i64, tpu.core_type = #tpu.core_type<tc>, window_params = [{transform_indices = @transform_0, window_bounds = array<i64: 32, 256>}, {pipeline_mode = #tpu.pipeline_mode<synchronous>, transform_indices = @transform_1, window_bounds = array<i64: 256, 32>}, {pipeline_mode = #tpu.pipeline_mode<synchronous>, transform_indices = @transform_2, window_bounds = array<i64: 256, 1>}, {pipeline_mode = #tpu.pipeline_mode<synchronous>, transform_indices = @transform_3, window_bounds = array<i64: 32, 256>}, {pipeline_mode = #tpu.pipeline_mode<synchronous>, transform_indices = @transform_4, window_bounds = array<i64: 32, 1>}, {transform_indices = @transform_5, window_bounds = array<i64: 32, 256>}]} {
    %c0 = arith.constant 0 : index
    %c0_0 = arith.constant 0 : index
    %0 = vector.load %arg2[%c0, %c0_0] : memref<32x256xf32, #tpu.memory_space<vmem>>, vector<32x256xf32>
    %1 = arith.truncf %0 : vector<32x256xf32> to vector<32x256xbf16>
    %c0_1 = arith.constant 0 : index
    %c0_2 = arith.constant 0 : index
    %2 = vector.load %arg3[%c0_1, %c0_2] : memref<256x32xbf16, #tpu.memory_space<vmem>>, vector<256x32xbf16>
    %cst = arith.constant dense<0.000000e+00> : vector<256x256xf32>
    %3 = tpu.matmul %2, %1, %cst {dimension_numbers = #tpu.dot_dimension_numbers<[1], [0], [0], [1], [0, 0, 1, 1], [], []>} : vector<256x32xbf16>, vector<32x256xbf16>, vector<256x256xf32> -> vector<256x256xf32>
    %c0_3 = arith.constant 0 : index
    %c0_4 = arith.constant 0 : index
    %4 = vector.load %arg4[%c0_3, %c0_4] : memref<256x1xf32, #tpu.memory_space<vmem>>, vector<256x1xf32>
    %5 = vector.broadcast %4 : vector<256x1xf32> to vector<256x256xf32>
    %6 = arith.addf %3, %5 : vector<256x256xf32>
    %7 = vector.shape_cast %6 : vector<256x256xf32> to vector<4x64x256xf32>
    %cst_5 = arith.constant dense<0xFF800000> : vector<4x256xf32>
    %8 = vector.multi_reduction <maximumf>, %7, %cst_5 [1] : vector<4x64x256xf32> to vector<4x256xf32>
    %9 = vector.shape_cast %8 : vector<4x256xf32> to vector<4x1x256xf32>
    %10 = vector.broadcast %9 : vector<4x1x256xf32> to vector<4x64x256xf32>
    %11 = arith.subf %7, %10 : vector<4x64x256xf32>
    %12 = math.exp %11 : vector<4x64x256xf32>
    %cst_6 = arith.constant dense<0.000000e+00> : vector<4x256xf32>
    %13 = vector.multi_reduction <add>, %12, %cst_6 [1] : vector<4x64x256xf32> to vector<4x256xf32>
    %14 = vector.shape_cast %13 : vector<4x256xf32> to vector<4x1x256xf32>
    %15 = tpu.reciprocal %14 {approx = true} : vector<4x1x256xf32> -> vector<4x1x256xf32>
    %16 = vector.broadcast %15 : vector<4x1x256xf32> to vector<4x64x256xf32>
    %17 = arith.mulf %12, %16 : vector<4x64x256xf32>
    %18 = vector.shape_cast %17 : vector<4x64x256xf32> to vector<256x256xf32>
    %19 = arith.truncf %18 : vector<256x256xf32> to vector<256x256xbf16>
    %c0_7 = arith.constant 0 : index
    %c0_8 = arith.constant 0 : index
    %20 = vector.load %arg5[%c0_7, %c0_8] : memref<32x256xbf16, #tpu.memory_space<vmem>>, vector<32x256xbf16>
    %cst_9 = arith.constant dense<0.000000e+00> : vector<32x256xf32>
    %21 = tpu.matmul %20, %19, %cst_9 {dimension_numbers = #tpu.dot_dimension_numbers<[1], [0], [0], [1], [0, 0, 1, 1], [], []>} : vector<32x256xbf16>, vector<256x256xbf16>, vector<32x256xf32> -> vector<32x256xf32>
    %c0_10 = arith.constant 0 : index
    %c0_11 = arith.constant 0 : index
    %22 = vector.load %arg6[%c0_10, %c0_11] : memref<32x1xf32, #tpu.memory_space<vmem>>, vector<32x1xf32>
    %23 = vector.broadcast %22 : vector<32x1xf32> to vector<32x256xf32>
    %24 = arith.addf %21, %23 : vector<32x256xf32>
    %c0_12 = arith.constant 0 : index
    %c0_13 = arith.constant 0 : index
    %25 = vector.load %arg7[%c0_12, %c0_13] : memref<32x256xf32, #tpu.memory_space<vmem>>, vector<32x256xf32>
    tpu.vector_store %arg7[%c0_12, %c0_13], %24 {strides = array<i32>} : memref<32x256xf32, #tpu.memory_space<vmem>>, vector<32x256xf32>,
    return
  }
  func.func @transform_0(%arg0: i32, %arg1: i32) -> (i32, i32) {
    %c0_i32 = arith.constant 0 : i32
    return %arg0, %arg1 : i32, i32
  }
  func.func @transform_1(%arg0: i32, %arg1: i32) -> (i32, i32) {
    %c0_i32 = arith.constant 0 : i32
    %c0_i32_0 = arith.constant 0 : i32
    %c0_i32_1 = arith.constant 0 : i32
    return %c0_i32, %c0_i32_0 : i32, i32
  }
  func.func @transform_2(%arg0: i32, %arg1: i32) -> (i32, i32) {
    %c0_i32 = arith.constant 0 : i32
    %c0_i32_0 = arith.constant 0 : i32
    %c0_i32_1 = arith.constant 0 : i32
    return %c0_i32, %c0_i32_0 : i32, i32
  }
  func.func @transform_3(%arg0: i32, %arg1: i32) -> (i32, i32) {
    %c0_i32 = arith.constant 0 : i32
    %c0_i32_0 = arith.constant 0 : i32
    %c0_i32_1 = arith.constant 0 : i32
    return %c0_i32, %c0_i32_0 : i32, i32
  }
  func.func @transform_4(%arg0: i32, %arg1: i32) -> (i32, i32) {
    %c0_i32 = arith.constant 0 : i32
    %c0_i32_0 = arith.constant 0 : i32
    %c0_i32_1 = arith.constant 0 : i32
    return %c0_i32, %c0_i32_0 : i32, i32
  }
  func.func @transform_5(%arg0: i32, %arg1: i32) -> (i32, i32) {
    %c0_i32 = arith.constant 0 : i32
    return %arg0, %arg1 : i32, i32
  }
}

</mosaic_0001>

<bundles_post_ra>
// kernel: attention_quantizer_forward.1
= control target key start
LH: loop header
LB: loop body
LE: loop exit
PB: predicated region body
PF: predicated region fallthrough
CT: control target
= control target key end

     0   :  { %s1833_s18 = smov 0   ;;  %s1835_s19 = smov 0   ;;  %s2780_s0 = inlined_call_operand.vmem [shape: f32[64,256], index: 0, kind: input, shape index: {}]   ;;  %s2781_s1 = inlined_call_operand.vmem [shape: bf16[256,32], index: 1, kind: input, shape index: {}]   ;;  %s2782_s2 = inlined_call_operand.vmem [shape: f32[256,1], index: 2, kind: input, shape index: {}]   ;;  %s2783_s3 = inlined_call_operand.vmem [shape: bf16[32,256], index: 3, kind: input, shape index: {}]   ;;  %s2784_s4 = inlined_call_operand.vmem [shape: f32[32,1], index: 4, kind: input, shape index: {}]   ;;  %s2785_s5 = inlined_call_operand.vmem [shape: f32[64,256], index: 5, kind: output, shape index: {}]  }
   0x1   :  { %s1837_s20 = smov 0  }
   0x2 LB: > { %s27_s21 = sadd.s32 1, %s1796_s19  ;;  %p1538_p0 = scmp.ge.s32.totalorder %s1800_s20, 1  ;;  %s1800_s20 = sphi %s1837_s20, %s15_s20   ;;  %s1796_s19 = sphi %s1835_s19, %s2874_s19   ;;  %s1792_s18 = sphi %s1833_s18, %s2873_s18  }
   0x3   : > { %p29_p1 = scmp.ge.s32.totalorder %s27_s21, 2  ;;  %p210_p2 = scmp.lt.s32.totalorder %s1800_s20, 3 }
   0x5   : > { %s2876_s21 = smov (%p29_p1, %s27_s21), 0  ;;  %p211_p3 = pnand %p1538_p0, %p210_p2 }
   0x7   : > { %214 = sbr.rel (%p211_p3) target bundleno = 699 (0x2bb), region = 40 }
   0xe   : > { %s1539_s22 = sshll.u32 %s1792_s18, 2  ;;  %v1802_v0 = vmov 0   ;;  %v317_v13 = vld [vmem:[%s2782_s2] sm:$0xff]  ;;  %v319_v14 = vld [vmem:[%s2782_s2 + $0x10] sm:$0xff]  ;;  %vm589_vm0 = vcmask 261120   ;;  %v318_v16 = vld [vmem:[%s2782_s2 + $0x8] sm:$0xff] }
   0xf   : > { %p250_p4 = scmp.lt.s32.totalorder %s1539_s22, 7  ;;  %670 = vmatprep.mubr.bf16.mxu0 %v1802_v0  ;;  %1610 = vset.pattern.permute.xlu0 %v1802_v0  ;;  %v1612_v15 = vld [vmem:[%s2781_s1] sm:$0xff]   ;;  %v320_v17 = vld [vmem:[%s2782_s2 + $0x18] sm:$0xff]  ;;  %v322_v19 = vld [vmem:[%s2782_s2 + $0x28] sm:$0xff] }
  0x10   : > { %1611 = vset.pattern.permute.xlu1 %v1802_v0  ;;  %351 = vperm.xlu0 %1610, %v317_v13   ;;  %v321_v18 = vld [vmem:[%s2782_s2 + $0x20] sm:$0xff]  ;;  %v1613_v20 = vld [vmem:[%s2781_s1 + $0x8] sm:$0xff]   ;;  %v323_v21 = vld [vmem:[%s2782_s2 + $0x30] sm:$0xff] }
  0x11   : > { %s2878_s22 = smov (!%p250_p4, %s1539_s22), 7  ;;  %361 = vperm.xlu1 %1611, %v319_v14   ;;  %v324_v22 = vld [vmem:[%s2782_s2 + $0x38] sm:$0xff]  ;;  %v325_v23 = vld [vmem:[%s2782_s2 + $0x40] sm:$0xff]  ;;  %v326_v24 = vld [vmem:[%s2782_s2 + $0x48] sm:$0xff] }
  0x12   : > { %s1583_s23 = sshll.u32 %s2878_s22, 4  ;;  %v1614_v25 = vld [vmem:[%s2781_s1 + $0x10] sm:$0xff]   ;;  %v328_v27 = vld [vmem:[%s2782_s2 + $0x58] sm:$0xff]  ;;  %v329_v28 = vld [vmem:[%s2782_s2 + $0x60] sm:$0xff] }
  0x13   : > { %s257_s26 = scalar_lea.vmem %s2780_s0, %s1583_s23  ;;  %v327_v26 = vld [vmem:[%s2782_s2 + $0x50] sm:$0xff]  ;;  %v330_v29 = vld [vmem:[%s2782_s2 + $0x68] sm:$0xff]  ;;  %v1615_v30 = vld [vmem:[%s2781_s1 + $0x18] sm:$0xff]   ;;  %s269_s16 = scalar_lea.vmem %s2785_s5, %s1583_s23 }
  0x14   : > { %v274_v1 = vld [vmem:[%s257_s26 + $0x8] sm:$0xff]  ;;  %v276_v2 = vld [vmem:[%s257_s26 + $0x18] sm:$0xff]  ;;  %v273_v3 = vld [vmem:[%s257_s26] sm:$0xff]  ;;  %356 = vperm.xlu0 %1610, %v318_v16  }
  0x15   : > { %v282_v4 = vpack.c.bf16 %v276_v2, %v274_v1  ;;  %v275_v5 = vld [vmem:[%s257_s26 + $0x10] sm:$0xff]  ;;  %v278_v6 = vld [vmem:[%s257_s26 + $0x28] sm:$0xff]  ;;  %v280_v7 = vld [vmem:[%s257_s26 + $0x38] sm:$0xff]  ;;  %366 = vperm.xlu1 %1611, %v320_v17  }
  0x16   : > { %v281_v8 = vpack.c.bf16 %v275_v5, %v273_v3  ;;  %v284_v9 = vpack.c.bf16 %v280_v7, %v278_v6  ;;  %v277_v10 = vld [vmem:[%s257_s26 + $0x20] sm:$0xff]  ;;  %v279_v11 = vld [vmem:[%s257_s26 + $0x30] sm:$0xff]  ;;  %v332_v32 = vld [vmem:[%s2782_s2 + $0x78] sm:$0xff] }
  0x17   : > { %638 = vmatprep.subr.bf16.mxu0 %v282_v4  ;;  %v283_v12 = vpack.c.bf16 %v279_v11, %v277_v10  ;;  %v331_v31 = vld [vmem:[%s2782_s2 + $0x70] sm:$0xff]  ;;  %v333_v33 = vld [vmem:[%s2782_s2 + $0x80] sm:$0xff]  ;;  %v334_v34 = vld [vmem:[%s2782_s2 + $0x88] sm:$0xff] }
  0x18   : > { %639 = vmatpush1.bf16.msra.mxu0 %v281_v8  ;;  %371 = vperm.xlu0 %1610, %v321_v18   ;;  %v1616_v35 = vld [vmem:[%s2781_s1 + $0x20] sm:$0xff]   ;;  %v335_v36 = vld [vmem:[%s2782_s2 + $0x90] sm:$0xff]  ;;  %v336_v37 = vld [vmem:[%s2782_s2 + $0x98] sm:$0xff] }
  0x19   : > { %640 = vmatprep.subr.bf16.mxu0 %v284_v9  ;;  %376 = vperm.xlu1 %1611, %v322_v19   ;;  %v337_v38 = vld [vmem:[%s2782_s2 + $0xa0] sm:$0xff]  ;;  %v338_v39 = vld [vmem:[%s2782_s2 + $0xa8] sm:$0xff]  ;;  %v339_v41 = vld [vmem:[%s2782_s2 + $0xb0] sm:$0xff] }
  0x1a   : > { %v1617_v40 = vld [vmem:[%s2781_s1 + $0x28] sm:$0xff]   ;;  %v340_v42 = vld [vmem:[%s2782_s2 + $0xb8] sm:$0xff]  ;;  %v341_v43 = vld [vmem:[%s2782_s2 + $0xc0] sm:$0xff] }
  0x1b   : > { %v342_v44 = vld [vmem:[%s2782_s2 + $0xc8] sm:$0xff]  ;;  %v1618_v45 = vld [vmem:[%s2781_s1 + $0x30] sm:$0xff]   ;;  %v344_v47 = vld [vmem:[%s2782_s2 + $0xd8] sm:$0xff] }
  0x1c   : > { %641 = vmatpush1.bf16.msra.mxu0 %v283_v12  ;;  %381 = vperm.xlu0 %1610, %v323_v21   ;;  %v343_v46 = vld [vmem:[%s2782_s2 + $0xd0] sm:$0xff]  ;;  %v345_v48 = vld [vmem:[%s2782_s2 + $0xe0] sm:$0xff]  ;;  %v346_v49 = vld [vmem:[%s2782_s2 + $0xe8] sm:$0xff] }
  0x1d   : > { %386 = vperm.xlu1 %1611, %v324_v22   ;;  %v1619_v50 = vld [vmem:[%s2781_s1 + $0x38] sm:$0xff]   ;;  %v347_v51 = vld [vmem:[%s2782_s2 + $0xf0] sm:$0xff]  ;;  %v1339_v53 = vld [vmem:[%s2784_s4] sm:$0xff] }
  0x1e   : > { %v348_v52 = vld [vmem:[%s2782_s2 + $0xf8] sm:$0xff]  ;;  %v1340_v54 = vld [vmem:[%s2784_s4 + $0x8] sm:$0xff]  ;;  %v1620_v55 = vld [vmem:[%s2781_s1 + $0x40] sm:$0xff]  }
  0x1f   : > { %1561 = vmatmul.mubr.msk.bf16.vlgmr.msra.gmra.mrb[0].mxu0 %vm589_vm0, %v1612_v15  ;;  %v1341_v56 = vld [vmem:[%s2784_s4 + $0x10] sm:$0xff]  ;;  %v1342_v57 = vld [vmem:[%s2784_s4 + $0x18] sm:$0xff]  ;;  %v1621_v58 = vld [vmem:[%s2781_s1 + $0x48] sm:$0xff]  }
  0x20   : > { %680 = vmatprep.mubr.bf16.mxu0 %v1802_v0  ;;  %391 = vperm.xlu0 %1610, %v325_v23   ;;  %v1622_v59 = vld [vmem:[%s2781_s1 + $0x50] sm:$0xff]   ;;  %v1623_v60 = vld [vmem:[%s2781_s1 + $0x58] sm:$0xff]   ;;  %v1624_v61 = vld [vmem:[%s2781_s1 + $0x60] sm:$0xff]  }
  0x21   : > { %396 = vperm.xlu1 %1611, %v326_v24   ;;  %v1625_v62 = vld [vmem:[%s2781_s1 + $0x68] sm:$0xff]   ;;  %v1626_v63 = vld [vmem:[%s2781_s1 + $0x70] sm:$0xff]   ;;  %v1627_v1 = vld [vmem:[%s2781_s1 + $0x78] sm:$0xff]  }
  0x24   : > { %401 = vperm.xlu0 %1610, %v327_v26  }
  0x25   : > { %406 = vperm.xlu1 %1611, %v328_v27  }
  0x27   : > { %1562 = vmatmul.mubr.msk.bf16.gmra.mrb[4].mxu0 %vm589_vm0, %v1613_v20 }
  0x28   : > { %690 = vmatprep.mubr.bf16.mxu0 %v1802_v0  ;;  %411 = vperm.xlu0 %1610, %v329_v28  }
  0x29   : > { %416 = vperm.xlu1 %1611, %v330_v29  }
  0x2c   : > { %421 = vperm.xlu0 %1610, %v331_v31  }
  0x2d   : > { %426 = vperm.xlu1 %1611, %v332_v32  }
  0x2f   : > { %1563 = vmatmul.mubr.msk.bf16.gmra.mrb[8].mxu0 %vm589_vm0, %v1614_v25 }
  0x30   : > { %700 = vmatprep.mubr.bf16.mxu0 %v1802_v0  ;;  %431 = vperm.xlu0 %1610, %v333_v33  }
  0x31   : > { %436 = vperm.xlu1 %1611, %v334_v34  }
  0x34   : > { %441 = vperm.xlu0 %1610, %v335_v36  }
  0x35   : > { %446 = vperm.xlu1 %1611, %v336_v37  }
  0x37   : > { %1564 = vmatmul.mubr.msk.bf16.gmra.mrb[12].mxu0 %vm589_vm0, %v1615_v30 }
  0x38   : > { %710 = vmatprep.mubr.bf16.mxu0 %v1802_v0  ;;  %451 = vperm.xlu0 %1610, %v337_v38  }
  0x39   : > { %456 = vperm.xlu1 %1611, %v338_v39  }
  0x3c   : > { %461 = vperm.xlu0 %1610, %v339_v41  }
  0x3d   : > { %466 = vperm.xlu1 %1611, %v340_v42  }
  0x3f   : > { %1565 = vmatmul.mubr.msk.bf16.gmra.mrb[16].mxu0 %vm589_vm0, %v1616_v35 }
  0x40   : > { %720 = vmatprep.mubr.bf16.mxu0 %v1802_v0  ;;  %471 = vperm.xlu0 %1610, %v341_v43  }
  0x41   : > { %476 = vperm.xlu1 %1611, %v342_v44  }
  0x44   : > { %481 = vperm.xlu0 %1610, %v343_v46  }
  0x45   : > { %486 = vperm.xlu1 %1611, %v344_v47  }
  0x47   : > { %1566 = vmatmul.mubr.msk.bf16.gmra.mrb[20].mxu0 %vm589_vm0, %v1617_v40 }
  0x48   : > { %730 = vmatprep.mubr.bf16.mxu0 %v1802_v0  ;;  %491 = vperm.xlu0 %1610, %v345_v48  }
  0x49   : > { %496 = vperm.xlu1 %1611, %v346_v49  }
  0x4c   : > { %501 = vperm.xlu0 %1610, %v347_v51  }
  0x4d   : > { %506 = vperm.xlu1 %1611, %v348_v52  }
  0x4f   : > { %1567 = vmatmul.mubr.msk.bf16.gmra.mrb[24].mxu0 %vm589_vm0, %v1618_v45 }
  0x50   : > { %740 = vmatprep.mubr.bf16.mxu0 %v1802_v0  ;;  %1345 = vperm.xlu0 %1610, %v1339_v53  }
  0x51   : > { %1350 = vperm.xlu1 %1611, %v1340_v54  }
  0x54   : > { %1355 = vperm.xlu0 %1610, %v1341_v56  }
  0x55   : > { %1360 = vperm.xlu1 %1611, %v1342_v57  }
  0x57   : > { %1568 = vmatmul.mubr.msk.bf16.gmra.mrb[28].mxu0 %vm589_vm0, %v1619_v50 }
  0x58   : > { %750 = vmatprep.mubr.bf16.mxu0 %v1802_v0 }
  0x5f   : > { %1569 = vmatmul.mubr.msk.bf16.gmra.mrb[32].mxu0 %vm589_vm0, %v1620_v55 }
  0x60   : > { %760 = vmatprep.mubr.bf16.mxu0 %v1802_v0 }
  0x67   : > { %1570 = vmatmul.mubr.msk.bf16.gmra.mrb[36].mxu0 %vm589_vm0, %v1621_v58 }
  0x68   : > { %770 = vmatprep.mubr.bf16.mxu0 %v1802_v0 }
  0x6f   : > { %1571 = vmatmul.mubr.msk.bf16.gmra.mrb[40].mxu0 %vm589_vm0, %v1622_v59 }
  0x70   : > { %780 = vmatprep.mubr.bf16.mxu0 %v1802_v0 }
  0x77   : > { %1572 = vmatmul.mubr.msk.bf16.gmra.mrb[44].mxu0 %vm589_vm0, %v1623_v60 }
  0x78   : > { %790 = vmatprep.mubr.bf16.mxu0 %v1802_v0 }
  0x7f   : > { %1573 = vmatmul.mubr.msk.bf16.gmra.mrb[48].mxu0 %vm589_vm0, %v1624_v61 }
  0x80   : > { %800 = vmatprep.mubr.bf16.mxu0 %v1802_v0 }
  0x87   : > { %1574 = vmatmul.mubr.msk.bf16.gmra.mrb[52].mxu0 %vm589_vm0, %v1625_v62 }
  0x88   : > { %810 = vmatprep.mubr.bf16.mxu0 %v1802_v0 }
  0x8f   : > { %1575 = vmatmul.mubr.msk.bf16.gmra.mrb[56].mxu0 %vm589_vm0, %v1626_v63  ;;  %v352_v2 = vpop.permute.xlu0 %351 }
  0x90   : > { %820 = vmatprep.mubr.bf16.mxu0 %v1802_v0  ;;  %v362_v10 = vpop.permute.xlu1 %361 }
  0x93   : > { %v357_v5 = vpop.permute.xlu0 %356 }
  0x94   : > { %v367_v17 = vpop.permute.xlu1 %366 }
  0x97   : > { %1576 = vmatmul.mubr.msk.bf16.gmra.mrb[60].mxu0 %vm589_vm0, %v1627_v1  ;;  %v372_v27 = vpop.permute.xlu0 %371 }
  0x98   : > { %v377_v31 = vpop.permute.xlu1 %376 }
  0x9b   : > { %v382_v41 = vpop.permute.xlu0 %381 }
  0x9c   : > { %v387_v45 = vpop.permute.xlu1 %386 }
  0x9f   : > { %v392_v58 = vpop.permute.xlu0 %391 }
  0xa0   : > { %v397_v61 = vpop.permute.xlu1 %396 }
  0xf2   : > { %v672_v3 = vpop.f32.mrb[0].mxu0 }
  0xf3   : > { %v674_v4 = vpop.f32.mrb[1].mxu0  ;;  %v2049_v7 = vadd.f32 %v672_v3, %v352_v2 }
  0xf4   : > { %v676_v6 = vpop.f32.mrb[2].mxu0  ;;  %v2053_v11 = vadd.f32 %v674_v4, %v352_v2 }
  0xf5   : > { %v2051_v8 = vadd.f32 %v676_v6, %v357_v5  ;;  %v678_v9 = vpop.f32.mrb[3].mxu0 }
  0xf6   : > { %v2055_v0 = vadd.f32 %v678_v9, %v357_v5 }
  0xf7   : > { %v831_v12 = vmax.f32 %v2049_v7, %v2051_v8 }
  0xf8   : > { %v844_v13 = vmax.f32 %v2053_v11, %v2055_v0 }
  0xfa   : > { %v682_v14 = vpop.f32.mrb[4].mxu0 }
  0xfb   : > { %v2061_v15 = vadd.f32 %v682_v14, %v362_v10  ;;  %v684_v16 = vpop.f32.mrb[5].mxu0 }
  0xfc   : > { %v2063_v18 = vadd.f32 %v684_v16, %v362_v10  ;;  %v686_v19 = vpop.f32.mrb[6].mxu0 }
  0xfd   : > { %v832_v20 = vmax.f32 %v831_v12, %v2061_v15  ;;  %v2066_v21 = vadd.f32 %v686_v19, %v367_v17  ;;  %v688_v22 = vpop.f32.mrb[7].mxu0 }
  0xfe   : > { %v845_v23 = vmax.f32 %v844_v13, %v2063_v18  ;;  %v2069_v24 = vadd.f32 %v688_v22, %v367_v17 }
  0xff   : > { %v833_v25 = vmax.f32 %v832_v20, %v2066_v21  ;;  %v402_v20 = vpop.permute.xlu0 %401 }
 0x100   : > { %v846_v26 = vmax.f32 %v845_v23, %v2069_v24 }
 0x102   : > { %v692_v28 = vpop.f32.mrb[8].mxu0 }
 0x103   : > { %v2073_v29 = vadd.f32 %v692_v28, %v372_v27  ;;  %v694_v30 = vpop.f32.mrb[9].mxu0 }
 0x104   : > { %v2075_v32 = vadd.f32 %v694_v30, %v372_v27  ;;  %v696_v33 = vpop.f32.mrb[10].mxu0 }
 0x105   : > { %v834_v34 = vmax.f32 %v833_v25, %v2073_v29  ;;  %v2078_v35 = vadd.f32 %v696_v33, %v377_v31  ;;  %v698_v36 = vpop.f32.mrb[11].mxu0 }
 0x106   : > { %v847_v37 = vmax.f32 %v846_v26, %v2075_v32  ;;  %v2081_v38 = vadd.f32 %v698_v36, %v377_v31 }
 0x107   : > { %v835_v39 = vmax.f32 %v834_v34, %v2078_v35 }
 0x108   : > { %v848_v40 = vmax.f32 %v847_v37, %v2081_v38 }
 0x10a   : > { %v702_v42 = vpop.f32.mrb[12].mxu0 }
 0x10b   : > { %v2085_v43 = vadd.f32 %v702_v42, %v382_v41  ;;  %v704_v44 = vpop.f32.mrb[13].mxu0 }
 0x10c   : > { %v2087_v46 = vadd.f32 %v704_v44, %v382_v41  ;;  %v706_v47 = vpop.f32.mrb[14].mxu0  ;;  %v407_v41 = vpop.permute.xlu1 %406 }
 0x10d   : > { %v836_v48 = vmax.f32 %v835_v39, %v2085_v43  ;;  %v2090_v49 = vadd.f32 %v706_v47, %v387_v45  ;;  %v708_v50 = vpop.f32.mrb[15].mxu0 }
 0x10e   : > { %v849_v51 = vmax.f32 %v848_v40, %v2087_v46  ;;  %v2093_v52 = vadd.f32 %v708_v50, %v387_v45  ;;  %v412_v50 = vpop.permute.xlu0 %411 }
 0x10f   : > { %v837_v53 = vmax.f32 %v836_v48, %v2090_v49 }
 0x110   : > { %v850_v54 = vmax.f32 %v849_v51, %v2093_v52 }
 0x111   : > { %v838_v55 = vrot.slane %v837_v53, 4 }
 0x112   : > { %v851_v56 = vrot.slane %v850_v54, 4  ;;  %v712_v57 = vpop.f32.mrb[16].mxu0 }
 0x113   : > { %v839_v59 = vmax.f32 %v837_v53, %v838_v55  ;;  %v714_v60 = vpop.f32.mrb[17].mxu0  ;;  %v2097_v2 = vadd.f32 %v712_v57, %v392_v58 }
 0x114   : > { %v852_v62 = vmax.f32 %v850_v54, %v851_v56  ;;  %v716_v63 = vpop.f32.mrb[18].mxu0  ;;  %v2101_v6 = vadd.f32 %v714_v60, %v392_v58  ;;  %v417_v56 = vpop.permute.xlu1 %416 }
 0x115   : > { %v840_v1 = vrot.slane %v839_v59, 2  ;;  %v2099_v3 = vadd.f32 %v716_v63, %v397_v61  ;;  %v718_v4 = vpop.f32.mrb[19].mxu0 }
 0x116   : > { %v853_v5 = vrot.slane %v852_v62, 2  ;;  %v2103_v9 = vadd.f32 %v718_v4, %v397_v61 }
 0x117   : > { %v841_v10 = vmax.f32 %v839_v59, %v840_v1  ;;  %v857_v12 = vmax.f32 %v2097_v2, %v2099_v3 }
 0x118   : > { %v854_v13 = vmax.f32 %v852_v62, %v853_v5  ;;  %v870_v14 = vmax.f32 %v2101_v6, %v2103_v9 }
 0x119   : > { %v842_v16 = vrot.slane %v841_v10, 1 }
 0x11a   : > { %v855_v17 = vrot.slane %v854_v13, 1  ;;  %v722_v19 = vpop.f32.mrb[20].mxu0 }
 0x11b   : > { %v843_v22 = vmax.f32 %v841_v10, %v842_v16  ;;  %v724_v23 = vpop.f32.mrb[21].mxu0  ;;  %v2111_v26 = vadd.f32 %v722_v19, %v402_v20 }
 0x11c   : > { %v2109_v25 = vmax.f32 %v854_v13, %v855_v17  ;;  %v726_v27 = vpop.f32.mrb[22].mxu0 }
 0x11d   : > { %v935_v28 = vsub.f32 %v2049_v7, %v843_v22  ;;  %v937_v30 = vsub.f32 %v2051_v8, %v843_v22  ;;  %v939_v31 = vsub.f32 %v2061_v15, %v843_v22  ;;  %v941_v33 = vsub.f32 %v2066_v21, %v843_v22  ;;  %v728_v34 = vpop.f32.mrb[23].mxu0 }
 0x11e   : > { %v943_v36 = vsub.f32 %v2073_v29, %v843_v22  ;;  %v945_v37 = vsub.f32 %v2078_v35, %v843_v22  ;;  %v947_v39 = vsub.f32 %v2085_v43, %v843_v22  ;;  %v949_v40 = vsub.f32 %v2090_v49, %v843_v22 }
 0x11f   : > { %v999_v42 = vmul.f32 1.442695, %v935_v28  ;;  %v1003_v44 = vmul.f32 1.442695, %v937_v30  ;;  %v944_v7 = vsub.f32 %v2075_v32, %v2109_v25  ;;  %v2123_v8 = vadd.f32 %v724_v23, %v402_v20  ;;  %v422_v20 = vpop.permute.xlu0 %421 }
 0x120   : > { %v1007_v15 = vmul.f32 1.442695, %v939_v31  ;;  %v946_v21 = vsub.f32 %v2081_v38, %v2109_v25  ;;  %v1011_v29 = vmul.f32 1.442695, %v941_v33  ;;  %v948_v35 = vsub.f32 %v2087_v46, %v2109_v25 }
 0x121   : > { %1634 = vpow2.f32 %v999_v42  ;;  %v950_v43 = vsub.f32 %v2093_v52, %v2109_v25  ;;  %v858_v47 = vmax.f32 %v857_v12, %v2111_v26  ;;  %v871_v48 = vmax.f32 %v870_v14, %v2123_v8 }
 0x122   : > { %1636 = vpow2.f32 %v1003_v44  ;;  %v732_v45 = vpop.f32.mrb[24].mxu0  ;;  %v1015_v51 = vmul.f32 1.442695, %v943_v36  ;;  %v2133_v53 = vadd.f32 %v726_v27, %v407_v41  ;;  %v2135_v54 = vadd.f32 %v728_v34, %v407_v41 }
 0x123   : > { %v734_v49 = vpop.f32.mrb[25].mxu0  ;;  %1638 = vpow2.f32 %v1007_v15  ;;  %v1019_v57 = vmul.f32 1.442695, %v945_v37  ;;  %v2137_v58 = vadd.f32 %v732_v45, %v412_v50  ;;  %v1023_v4 = vmul.f32 1.442695, %v947_v39 }
 0x124   : > { %v736_v55 = vpop.f32.mrb[26].mxu0  ;;  %1640 = vpow2.f32 %v1011_v29  ;;  %v2139_v59 = vadd.f32 %v734_v49, %v412_v50  ;;  %v859_v61 = vmax.f32 %v858_v47, %v2133_v53  ;;  %v872_v62 = vmax.f32 %v871_v48, %v2135_v54 }
 0x125   : > { %v738_v60 = vpop.f32.mrb[27].mxu0  ;;  %v2143_v63 = vadd.f32 %v736_v55, %v417_v56  ;;  %v936_v5 = vsub.f32 %v2053_v11, %v2109_v25  ;;  %v938_v10 = vsub.f32 %v2055_v0, %v2109_v25  ;;  %v940_v12 = vsub.f32 %v2063_v18, %v2109_v25 }
 0x126   : > { %v2145_v1 = vadd.f32 %v738_v60, %v417_v56  ;;  %1642 = vpow2.f32 %v1015_v51  ;;  %v860_v13 = vmax.f32 %v859_v61, %v2137_v58  ;;  %v873_v14 = vmax.f32 %v872_v62, %v2139_v59 }
 0x127   : > { %v942_v16 = vsub.f32 %v2069_v24, %v2109_v25  ;;  %v1001_v17 = vmul.f32 1.442695, %v936_v5  ;;  %v1005_v19 = vmul.f32 1.442695, %v938_v10  ;;  %1644 = vpow2.f32 %v1019_v57  ;;  %v427_v24 = vpop.permute.xlu1 %426  ;;  %v432_v57 = vpop.permute.xlu0 %431 }
 0x128   : > { %v1027_v22 = vmul.f32 1.442695, %v949_v40  ;;  %v861_v11 = vmax.f32 %v860_v13, %v2143_v63  ;;  %v874_v0 = vmax.f32 %v873_v14, %v2145_v1  ;;  %1646 = vpow2.f32 %v1023_v4 }
 0x129   : > { %v1009_v30 = vmul.f32 1.442695, %v940_v12  ;;  %1648 = vpow2.f32 %v1001_v17  ;;  %v1013_v36 = vmul.f32 1.442695, %v942_v16  ;;  %v1021_v10 = vmul.f32 1.442695, %v946_v21 }
 0x12a   : > { %v742_v23 = vpop.f32.mrb[28].mxu0  ;;  %1650 = vpow2.f32 %v1005_v19  ;;  %v1017_v46 = vmul.f32 1.442695, %v944_v7 }
 0x12b   : > { %v2159_v27 = vpop.eup %1634  ;;  %v2161_v18 = vadd.f32 %v742_v23, %v422_v20  ;;  %v744_v28 = vpop.f32.mrb[29].mxu0  ;;  %1652 = vpow2.f32 %v1027_v22 }
 0x12c   : > { %v2163_v31 = vpop.eup %1636  ;;  %v2165_v33 = vadd.f32 %v744_v28, %v422_v20  ;;  %v746_v34 = vpop.f32.mrb[30].mxu0  ;;  %1654 = vpow2.f32 %v1009_v30 }
 0x12d   : > { %v1127_v37 = vadd.f32 %v2163_v31, %v2159_v27  ;;  %v862_v39 = vmax.f32 %v861_v11, %v2161_v18  ;;  %v2170_v40 = vadd.f32 %v746_v34, %v427_v24  ;;  %v748_v41 = vpop.f32.mrb[31].mxu0  ;;  %v2172_v42 = vpop.eup %1638  ;;  %1656 = vpow2.f32 %v1013_v36 }
 0x12e   : > { %v875_v44 = vmax.f32 %v874_v0, %v2165_v33  ;;  %v2175_v15 = vadd.f32 %v748_v41, %v427_v24  ;;  %v2177_v29 = vpop.eup %1640  ;;  %v437_v5 = vpop.permute.xlu1 %436  ;;  %v1025_v0 = vmul.f32 1.442695, %v948_v35  ;;  %v1029_v24 = vmul.f32 1.442695, %v950_v43 }
 0x12f   : > { %v1128_v45 = vadd.f32 %v2172_v42, %v1127_v37  ;;  %v863_v47 = vmax.f32 %v862_v39, %v2170_v40  ;;  %1658 = vpow2.f32 %v1021_v10  ;;  %v442_v7 = vpop.permute.xlu0 %441 }
 0x130   : > { %v876_v48 = vmax.f32 %v875_v44, %v2175_v15  ;;  %v2183_v51 = vpop.eup %1642  ;;  %1660 = vpow2.f32 %v1025_v0 }
 0x131   : > { %v1129_v49 = vadd.f32 %v2177_v29, %v1128_v45  ;;  %v864_v50 = vrot.slane %v863_v47, 4  ;;  %v2186_v4 = vpop.eup %1644  ;;  %1662 = vpow2.f32 %v1029_v24 }
 0x132   : > { %v877_v55 = vrot.slane %v876_v48, 4  ;;  %v752_v56 = vpop.f32.mrb[32].mxu0  ;;  %v2191_v14 = vpop.eup %1646  ;;  %1664 = vpow2.f32 %v1017_v46 }
 0x133   : > { %v1130_v60 = vadd.f32 %v2183_v51, %v1129_v49  ;;  %v865_v61 = vmax.f32 %v863_v47, %v864_v50  ;;  %v754_v62 = vpop.f32.mrb[33].mxu0  ;;  %v2194_v19 = vadd.f32 %v752_v56, %v432_v57  ;;  %v2198_v11 = vpop.eup %1648 }
 0x134   : > { %v878_v12 = vmax.f32 %v876_v48, %v877_v55  ;;  %v756_v13 = vpop.f32.mrb[34].mxu0  ;;  %v2203_v21 = vadd.f32 %v754_v62, %v432_v57  ;;  %v2207_v28 = vpop.eup %1650 }
 0x135   : > { %v1131_v16 = vadd.f32 %v2186_v4, %v1130_v60  ;;  %v866_v17 = vrot.slane %v865_v61, 2  ;;  %v2196_v20 = vadd.f32 %v756_v13, %v437_v5  ;;  %v758_v22 = vpop.f32.mrb[35].mxu0  ;;  %v2215_v37 = vpop.eup %1652  ;;  %v1140_v41 = vadd.f32 %v2207_v28, %v2198_v11 }
 0x136   : > { %v879_v38 = vrot.slane %v878_v12, 2  ;;  %v2205_v23 = vadd.f32 %v758_v22, %v437_v5  ;;  %v2224_v44 = vpop.eup %1654 }
 0x137   : > { %v1132_v30 = vadd.f32 %v2191_v14, %v1131_v16  ;;  %v867_v34 = vmax.f32 %v865_v61, %v866_v17  ;;  %v883_v36 = vmax.f32 %v2194_v19, %v2196_v20  ;;  %v1141_v48 = vadd.f32 %v2224_v44, %v1140_v41  ;;  %v2228_v32 = vpop.eup %1656 }
 0x138   : > { %v880_v35 = vmax.f32 %v878_v12, %v879_v38  ;;  %v896_v39 = vmax.f32 %v2203_v21, %v2205_v23  ;;  %2811 = vst [vmem:[#allocation2_spill] sm:$0xff] %v2228_v32 }
 0x139   : > { %v1133_v52 = vadd.f32 %v2215_v37, %v1132_v30  ;;  %v868_v43 = vrot.slane %v867_v34, 1  ;;  %v2235_v60 = vadd.f32 %v2228_v32, %v1141_v48 }
 0x13a   : > { %v881_v45 = vrot.slane %v880_v35, 1  ;;  %v762_v47 = vpop.f32.mrb[36].mxu0 }
 0x13b   : > { %v1134_v25 = vrot.slane %v1133_v52, 4  ;;  %v869_v49 = vmax.f32 %v867_v34, %v868_v43  ;;  %v764_v50 = vpop.f32.mrb[37].mxu0  ;;  %v2232_v56 = vadd.f32 %v762_v47, %v442_v7 }
 0x13c   : > { %v2230_v55 = vmax.f32 %v880_v35, %v881_v45  ;;  %v766_v57 = vpop.f32.mrb[38].mxu0 }
 0x13d   : > { %v1135_v61 = vadd.f32 %v1134_v25, %v1133_v52  ;;  %v951_v62 = vsub.f32 %v2097_v2, %v869_v49  ;;  %v953_v5 = vsub.f32 %v2099_v3, %v869_v49  ;;  %v955_v10 = vsub.f32 %v2111_v26, %v869_v49  ;;  %v768_v12 = vpop.f32.mrb[39].mxu0  ;;  %v2253_v52 = vpop.eup %1658 }
 0x13e   : > { %v957_v13 = vsub.f32 %v2133_v53, %v869_v49  ;;  %v959_v16 = vsub.f32 %v2137_v58, %v869_v49  ;;  %v961_v17 = vsub.f32 %v2143_v63, %v869_v49  ;;  %v963_v22 = vsub.f32 %v2161_v18, %v869_v49  ;;  %v447_v53 = vpop.permute.xlu1 %446  ;;  %2812 = vst [vmem:[#allocation3_spill] sm:$0xff] %v2253_v52  ;;  %v2259_v48 = vpop.eup %1660 }
 0x13f   : > { %v1136_v0 = vrot.slane %v1135_v61, 2  ;;  %v965_v38 = vsub.f32 %v2170_v40, %v869_v49  ;;  %v1031_v30 = vmul.f32 1.442695, %v951_v62  ;;  %v1035_v24 = vmul.f32 1.442695, %v953_v5  ;;  %2813 = vst [vmem:[#allocation4_spill] sm:$0xff] %v2259_v48  ;;  %v2267_v49 = vpop.eup %1662 }
 0x140   : > { %v1039_v34 = vmul.f32 1.442695, %v955_v10  ;;  %v1043_v2 = vmul.f32 1.442695, %v957_v13  ;;  %v952_v3 = vsub.f32 %v2101_v6, %v2230_v55  ;;  %v2247_v26 = vadd.f32 %v764_v50, %v442_v7  ;;  %2814 = vst [vmem:[#allocation5_spill] sm:$0xff] %v2267_v49  ;;  %v452_v50 = vpop.permute.xlu0 %451  ;;  %v2269_v62 = vpop.eup %1664 }
 0x141   : > { %v1137_v46 = vadd.f32 %v1136_v0, %v1135_v61  ;;  %1666 = vpow2.f32 %v1031_v30  ;;  %v1047_v58 = vmul.f32 1.442695, %v959_v16  ;;  %v1051_v35 = vmul.f32 1.442695, %v961_v17  ;;  %2815 = vst [vmem:[#allocation6_spill] sm:$0xff] %v2269_v62 }
 0x142   : > { %1668 = vpow2.f32 %v1035_v24  ;;  %v1055_v63 = vmul.f32 1.442695, %v963_v22  ;;  %v954_v18 = vsub.f32 %v2103_v9, %v2230_v55  ;;  %v956_v40 = vsub.f32 %v2123_v8, %v2230_v55  ;;  %v772_v41 = vpop.f32.mrb[40].mxu0  ;;  %v457_v13 = vpop.permute.xlu1 %456 }
 0x143   : > { %v1138_v43 = vrot.slane %v1137_v46, 1  ;;  %1670 = vpow2.f32 %v1039_v34  ;;  %v958_v6 = vsub.f32 %v2135_v54, %v2230_v55  ;;  %v960_v45 = vsub.f32 %v2139_v59, %v2230_v55  ;;  %v774_v47 = vpop.f32.mrb[41].mxu0 }
 0x144   : > { %1672 = vpow2.f32 %v1043_v2  ;;  %v962_v9 = vsub.f32 %v2145_v1, %v2230_v55  ;;  %v964_v8 = vsub.f32 %v2165_v33, %v2230_v55  ;;  %v966_v25 = vsub.f32 %v2175_v15, %v2230_v55  ;;  %v776_v7 = vpop.f32.mrb[42].mxu0 }
 0x145   : > { %v1139_v54 = vadd.f32 %v1138_v43, %v1137_v46  ;;  %1674 = vpow2.f32 %v1047_v58  ;;  %v1059_v59 = vmul.f32 1.442695, %v965_v38  ;;  %v778_v61 = vpop.f32.mrb[43].mxu0  ;;  %v1033_v5 = vmul.f32 1.442695, %v952_v3  ;;  %v462_v46 = vpop.permute.xlu0 %461 }
 0x146   : > { %1676 = vpow2.f32 %v1051_v35  ;;  %v1037_v10 = vmul.f32 1.442695, %v954_v18  ;;  %v1041_v1 = vmul.f32 1.442695, %v956_v40  ;;  %v1045_v33 = vmul.f32 1.442695, %v958_v6  ;;  %v467_v43 = vpop.permute.xlu1 %466 }
 0x147   : > { %1678 = vrcp.f32 %v1139_v54  ;;  %v1049_v16 = vmul.f32 1.442695, %v960_v45  ;;  %v1053_v17 = vmul.f32 1.442695, %v962_v9  ;;  %v884_v15 = vmax.f32 %v883_v36, %v2232_v56 }
 0x148   : > { %1680 = vpow2.f32 %v1055_v63  ;;  %v897_v55 = vmax.f32 %v896_v39, %v2247_v26  ;;  %v2279_v22 = vadd.f32 %v766_v57, %v447_v53  ;;  %v2281_v0 = vadd.f32 %v768_v12, %v447_v53 }
 0x149   : > { %1682 = vpow2.f32 %v1059_v59  ;;  %v2283_v38 = vadd.f32 %v772_v41, %v452_v50  ;;  %v2285_v30 = vadd.f32 %v774_v47, %v452_v50  ;;  %v1057_v24 = vmul.f32 1.442695, %v964_v8 }
 0x14a   : > { %1684 = vpow2.f32 %v1033_v5  ;;  %v885_v34 = vmax.f32 %v884_v15, %v2279_v22  ;;  %v2288_v2 = vadd.f32 %v776_v7, %v457_v13  ;;  %v782_v36 = vpop.f32.mrb[44].mxu0  ;;  %v898_v39 = vmax.f32 %v897_v55, %v2281_v0 }
 0x14b   : > { %v2290_v3 = vpop.eup %1666  ;;  %1686 = vpow2.f32 %v1037_v10  ;;  %v2293_v57 = vadd.f32 %v778_v61, %v457_v13  ;;  %v784_v12 = vpop.f32.mrb[45].mxu0  ;;  %v1143_v53 = vadd.f32 %v2269_v62, %v2235_v60  ;;  %v1061_v35 = vmul.f32 1.442695, %v966_v25 }
 0x14c   : > { %v2297_v58 = vpop.eup %1668  ;;  %1688 = vpow2.f32 %v1041_v1  ;;  %v886_v63 = vmax.f32 %v885_v34, %v2283_v38  ;;  %v2300_v18 = vadd.f32 %v782_v36, %v462_v46  ;;  %v786_v40 = vpop.f32.mrb[46].mxu0  ;;  %v899_v45 = vmax.f32 %v898_v39, %v2285_v30 }
 0x14d   : > { %v2302_v41 = vpop.eup %1670  ;;  %v1153_v6 = vadd.f32 %v2297_v58, %v2290_v3  ;;  %1690 = vpow2.f32 %v1045_v33  ;;  %v2307_v47 = vadd.f32 %v784_v12, %v462_v46  ;;  %v788_v60 = vpop.f32.mrb[47].mxu0  ;;  %v2312_v25 = vadd.f32 %v786_v40, %v467_v43 }
 0x14e   : > { %v2309_v9 = vpop.eup %1672  ;;  %1692 = vpow2.f32 %v1049_v16  ;;  %v887_v8 = vmax.f32 %v886_v63, %v2288_v2  ;;  %v1144_v7 = vadd.f32 %v2253_v52, %v1143_v53  ;;  %v900_v59 = vmax.f32 %v899_v45, %v2293_v57 }
 0x14f   : > { %v2315_v54 = vpop.eup %1674  ;;  %v1154_v50 = vadd.f32 %v2302_v41, %v1153_v6  ;;  %1694 = vpow2.f32 %v1053_v17  ;;  %v2319_v61 = vadd.f32 %v788_v60, %v467_v43  ;;  %v472_v17 = vpop.permute.xlu0 %471 }
 0x150   : > { %v2321_v5 = vpop.eup %1676  ;;  %1696 = vpow2.f32 %v1057_v24  ;;  %v888_v10 = vmax.f32 %v887_v8, %v2300_v18  ;;  %v1145_v1 = vadd.f32 %v2259_v48, %v1144_v7  ;;  %v901_v16 = vmax.f32 %v900_v59, %v2307_v47 }
 0x151   : > { %v2325_v13 = vpop.eup %1678  ;;  %v1155_v33 = vadd.f32 %v2309_v9, %v1154_v50  ;;  %1698 = vpow2.f32 %v1061_v35 }
 0x152   : > { %v2329_v15 = vpop.eup %1680  ;;  %v889_v55 = vmax.f32 %v888_v10, %v2312_v25  ;;  %v792_v34 = vpop.f32.mrb[48].mxu0  ;;  %v1146_v36 = vadd.f32 %v2267_v49, %v1145_v1  ;;  %v2335_v24 = vmul.f32 %v2325_v13, %v2159_v27  ;;  %v2339_v46 = vmul.f32 %v2325_v13, %v2163_v31 }
 0x153   : > { %v2341_v39 = vpop.eup %1682  ;;  %v1156_v12 = vadd.f32 %v2315_v54, %v1155_v33  ;;  %v902_v53 = vmax.f32 %v901_v16, %v2319_v61  ;;  %v2345_v35 = vadd.f32 %v792_v34, %v472_v17  ;;  %v794_v63 = vpop.f32.mrb[49].mxu0  ;;  %v2349_v40 = vmul.f32 %v2325_v13, %v2172_v42 }
 0x154   : > { %2816 = vst [vmem:[#allocation7_spill] sm:$0xff] %v2335_v24  ;;  %2817 = vst [vmem:[#allocation8_spill] sm:$0xff] %v2339_v46  ;;  %v2351_v43 = vpop.eup %1684  ;;  %v477_v27 = vpop.permute.xlu1 %476  ;;  %v890_v6 = vrot.slane %v889_v55, 4  ;;  %v2353_v45 = vadd.f32 %v794_v63, %v472_v17  ;;  %v1147_v60 = vrot.slane %v1146_v36, 4  ;;  %v2364_v1 = vmul.f32 %v2325_v13, %v2177_v29 }
 0x155   : > { %2818 = vst [vmem:[#allocation9_spill] sm:$0xff] %v2345_v35  ;;  %2819 = vst [vmem:[#allocation10_spill] sm:$0xff] %v2349_v40  ;;  %v796_v31 = vpop.f32.mrb[50].mxu0  ;;  %v2357_v7 = vpop.eup %1686  ;;  %v1157_v50 = vadd.f32 %v2321_v5, %v1156_v12  ;;  %v903_v59 = vrot.slane %v902_v53, 4  ;;  %v1630_v12 = vld [vmem:[%s2783_s3 + $0x4] ss:$8 sps:$4 sm:$0xff]  }
 0x156   : > { %2820 = vst [vmem:[#allocation11_spill] sm:$0xff] %v2353_v45  ;;  %v2360_v10 = vadd.f32 %v796_v31, %v477_v27  ;;  %v798_v42 = vpop.f32.mrb[51].mxu0  ;;  %2822 = vst [vmem:[#allocation13_spill] sm:$0xff] %v2364_v1  ;;  %v2366_v33 = vpop.eup %1688  ;;  %v1166_v16 = vadd.f32 %v2357_v7, %v2351_v43  ;;  %v891_v17 = vmax.f32 %v889_v55, %v890_v6  ;;  %1415 = vmatprep.mubr.bf16.mxu1 %v1630_v12 }
 0x157   : > { %v2370_v34 = vadd.f32 %v798_v42, %v477_v27  ;;  %v1148_v63 = vadd.f32 %v1147_v60, %v1146_v36  ;;  %v2375_v31 = vpop.eup %1690  ;;  %v1158_v8 = vadd.f32 %v2329_v15, %v1157_v50  ;;  %v904_v24 = vmax.f32 %v902_v53, %v903_v59  ;;  %v482_v46 = vpop.permute.xlu0 %481 }
 0x158   : > { %2821 = vst [vmem:[#allocation12_spill] sm:$0xff] %v2360_v10  ;;  %v909_v29 = vmax.f32 %v2345_v35, %v2360_v10  ;;  %v2382_v49 = vpop.eup %1692  ;;  %v1167_v55 = vadd.f32 %v2366_v33, %v1166_v16  ;;  %v892_v36 = vrot.slane %v891_v17, 2  ;;  %v2392_v59 = vmul.f32 %v2325_v13, %v2183_v51  ;;  %v487_v52 = vpop.permute.xlu1 %486 }
 0x159   : > { %2823 = vst [vmem:[#allocation14_spill] sm:$0xff] %v2370_v34  ;;  %v922_v27 = vmax.f32 %v2353_v45, %v2370_v34  ;;  %v1149_v6 = vrot.slane %v1148_v63, 2  ;;  %v2387_v60 = vpop.eup %1694  ;;  %v1159_v53 = vadd.f32 %v2341_v39, %v1158_v8  ;;  %v905_v50 = vrot.slane %v904_v24, 2 }
 0x15a   : > { %2824 = vst [vmem:[#allocation15_spill] sm:$0xff] %v2392_v59  ;;  %v2396_v42 = vmul.f32 %v2325_v13, %v2186_v4  ;;  %v2398_v16 = vpop.eup %1696  ;;  %v1168_v34 = vadd.f32 %v2375_v31, %v1167_v55  ;;  %v893_v45 = vmax.f32 %v891_v17, %v892_v36  ;;  %v802_v40 = vpop.f32.mrb[52].mxu0  ;;  %v2405_v8 = vmul.f32 %v2325_v13, %v2191_v14 }
 0x15b   : > { %v2401_v12 = vadd.f32 %v1149_v6, %v1148_v63  ;;  %v2407_v1 = vpop.eup %1698  ;;  %v1160_v51 = vrot.slane %v1159_v53, 4  ;;  %v906_v10 = vmax.f32 %v904_v24, %v905_v50  ;;  %v2409_v35 = vadd.f32 %v802_v40, %v482_v46  ;;  %v804_v4 = vpop.f32.mrb[53].mxu0 }
 0x15c   : > { %2825 = vst [vmem:[#allocation16_spill] sm:$0xff] %v2396_v42  ;;  %v1169_v17 = vadd.f32 %v2382_v49, %v1168_v34  ;;  %v894_v63 = vrot.slane %v893_v45, 1  ;;  %v2414_v55 = vadd.f32 %v804_v4, %v482_v46  ;;  %v806_v36 = vpop.f32.mrb[54].mxu0 }
 0x15d   : > { %2826 = vst [vmem:[#allocation17_spill] sm:$0xff] %v2409_v35  ;;  %v1161_v6 = vadd.f32 %v1160_v51, %v1159_v53  ;;  %v907_v14 = vrot.slane %v906_v10, 1  ;;  %v2417_v62 = vmax.f32 %v909_v29, %v2409_v35  ;;  %v2419_v32 = vadd.f32 %v806_v36, %v487_v52  ;;  %v808_v24 = vpop.f32.mrb[55].mxu0 }
 0x15e   : > { %2827 = vst [vmem:[#allocation18_spill] sm:$0xff] %v2414_v55  ;;  %v1170_v40 = vadd.f32 %v2387_v60, %v1169_v17  ;;  %v895_v50 = vmax.f32 %v893_v45, %v894_v63  ;;  %v2423_v48 = vmax.f32 %v922_v27, %v2414_v55  ;;  %v1151_v46 = vrot.slane %v2401_v12, 1 }
 0x15f   : > { %v1162_v59 = vrot.slane %v1161_v6, 2  ;;  %v2425_v34 = vmax.f32 %v906_v10, %v907_v14 }
 0x160   : > { %v1171_v29 = vadd.f32 %v2398_v16, %v1170_v40  ;;  %v967_v51 = vsub.f32 %v2194_v19, %v895_v50  ;;  %v969_v4 = vsub.f32 %v2196_v20, %v895_v50  ;;  %v971_v17 = vsub.f32 %v2232_v56, %v895_v50 }
 0x161   : > { %v1163_v45 = vadd.f32 %v1162_v59, %v1161_v6  ;;  %v973_v27 = vsub.f32 %v2279_v22, %v895_v50  ;;  %v975_v63 = vsub.f32 %v2283_v38, %v895_v50  ;;  %v977_v10 = vsub.f32 %v2288_v2, %v895_v50 }
 0x162   : > { %v1172_v36 = vadd.f32 %v2407_v1, %v1171_v29  ;;  %v979_v14 = vsub.f32 %v2300_v18, %v895_v50  ;;  %v981_v53 = vsub.f32 %v2312_v25, %v895_v50  ;;  %v1063_v40 = vmul.f32 1.442695, %v967_v51  ;;  %v812_v42 = vpop.f32.mrb[56].mxu0 }
 0x163   : > { %v1164_v19 = vrot.slane %v1163_v45, 1  ;;  %v1067_v55 = vmul.f32 1.442695, %v969_v4  ;;  %v1071_v20 = vmul.f32 1.442695, %v971_v17  ;;  %v968_v56 = vsub.f32 %v2203_v21, %v2425_v34  ;;  %v814_v59 = vpop.f32.mrb[57].mxu0 }
 0x164   : > { %v1173_v22 = vrot.slane %v1172_v36, 4  ;;  %1700 = vpow2.f32 %v1063_v40  ;;  %v1075_v38 = vmul.f32 1.442695, %v973_v27  ;;  %v2442_v6 = vadd.f32 %v808_v24, %v487_v52  ;;  %v816_v2 = vpop.f32.mrb[58].mxu0  ;;  %v492_v27 = vpop.permute.xlu0 %491 }
 0x165   : > { %v1165_v29 = vadd.f32 %v1164_v19, %v1163_v45  ;;  %1702 = vpow2.f32 %v1067_v55  ;;  %v1079_v18 = vmul.f32 1.442695, %v975_v63  ;;  %v1083_v35 = vmul.f32 1.442695, %v977_v10  ;;  %v818_v25 = vpop.f32.mrb[59].mxu0 }
 0x166   : > { %v1174_v50 = vadd.f32 %v1173_v22, %v1172_v36  ;;  %1704 = vpow2.f32 %v1071_v20  ;;  %v1087_v51 = vmul.f32 1.442695, %v979_v14  ;;  %v970_v4 = vsub.f32 %v2205_v23, %v2425_v34 }
 0x167   : > { %1706 = vrcp.f32 %v1165_v29  ;;  %v972_v21 = vsub.f32 %v2247_v26, %v2425_v34  ;;  %v974_v52 = vsub.f32 %v2281_v0, %v2425_v34  ;;  %v976_v24 = vsub.f32 %v2285_v30, %v2425_v34  ;;  %v497_v0 = vpop.permute.xlu1 %496 }
 0x168   : > { %v1175_v55 = vrot.slane %v1174_v50, 2  ;;  %1708 = vpow2.f32 %v1075_v38  ;;  %v978_v17 = vsub.f32 %v2293_v57, %v2425_v34  ;;  %v980_v45 = vsub.f32 %v2307_v47, %v2425_v34 }
 0x169   : > { %1710 = vpow2.f32 %v1079_v18  ;;  %v982_v23 = vsub.f32 %v2319_v61, %v2425_v34  ;;  %v1065_v26 = vmul.f32 1.442695, %v968_v56  ;;  %v2459_v63 = vadd.f32 %v1151_v46, %v2401_v12 }
 0x16a   : > { %v1176_v10 = vadd.f32 %v1175_v55, %v1174_v50  ;;  %1712 = vpow2.f32 %v1083_v35  ;;  %v1091_v30 = vmul.f32 1.442695, %v981_v53  ;;  %v1069_v36 = vmul.f32 1.442695, %v970_v4  ;;  %v822_v14 = vpop.f32.mrb[60].mxu0 }
 0x16b   : > { %1714 = vpow2.f32 %v1087_v51  ;;  %v1073_v57 = vmul.f32 1.442695, %v972_v21  ;;  %v1077_v40 = vmul.f32 1.442695, %v974_v52  ;;  %v1081_v19 = vmul.f32 1.442695, %v976_v24 }
 0x16c   : > { %v1177_v47 = vrot.slane %v1176_v10, 1  ;;  %v1085_v20 = vmul.f32 1.442695, %v978_v17  ;;  %v1089_v22 = vmul.f32 1.442695, %v980_v45  ;;  %v924_v61 = vmax.f32 %v2423_v48, %v2442_v6  ;;  %v824_v34 = vpop.f32.mrb[61].mxu0 }
 0x16d   : > { %1716 = vpow2.f32 %v1065_v26  ;;  %v2463_v12 = vadd.f32 %v812_v42, %v492_v27  ;;  %v2465_v46 = vadd.f32 %v814_v59, %v492_v27  ;;  %v2469_v35 = vmul.f32 %v2325_v13, %v2215_v37  ;;  %v826_v53 = vpop.f32.mrb[62].mxu0  ;;  %v502_v42 = vpop.permute.xlu0 %501  ;;  %v2837_v51 = vld [vmem:[#allocation2_spill] sm:$0xff] }
 0x16e   : > { %v2471_v56 = vpop.eup %1700  ;;  %v1178_v38 = vadd.f32 %v1177_v47, %v1176_v10  ;;  %1718 = vpow2.f32 %v1069_v36  ;;  %v2473_v29 = vadd.f32 %v816_v2, %v497_v0  ;;  %v2475_v18 = vadd.f32 %v818_v25, %v497_v0  ;;  %v828_v48 = vpop.f32.mrb[63].mxu0 }
 0x16f   : > { %v2477_v50 = vpop.eup %1702  ;;  %1720 = vpow2.f32 %v1073_v57  ;;  %v2828_v59 = vmax.f32 %v2417_v62, %v2419_v32  ;;  %v925_v13 = vmax.f32 %v924_v61, %v2465_v46  ;;  %v507_v2 = vpop.permute.xlu1 %506  ;;  %v2490_v21 = vadd.f32 %v822_v14, %v502_v42 }
 0x170   : > { %v2486_v4 = vpop.eup %1704  ;;  %1722 = vrcp.f32 %v1178_v38  ;;  %v1179_v25 = vadd.f32 %v2477_v50, %v2471_v56  ;;  %v2492_v52 = vadd.f32 %v824_v34, %v502_v42  ;;  %v2496_v17 = vadd.f32 %v826_v53, %v507_v2 }
 0x171   : > { %v912_v37 = vmax.f32 %v2828_v59, %v2463_v12  ;;  %v1707_v24 = vpop.eup %1706  ;;  %1724 = vpow2.f32 %v1091_v30  ;;  %v926_v55 = vmax.f32 %v925_v13, %v2475_v18  ;;  %v2501_v26 = vadd.f32 %v828_v48, %v507_v2 }
 0x172   : > { %v2498_v45 = vpop.eup %1708  ;;  %v1180_v27 = vadd.f32 %v2486_v4, %v1179_v25  ;;  %1726 = vpow2.f32 %v1077_v40  ;;  %v2504_v0 = vmul.f32 %v1707_v24, %v2290_v3  ;;  %v1093_v36 = vmul.f32 1.442695, %v982_v23 }
 0x173   : > { %v913_v62 = vmax.f32 %v912_v37, %v2473_v29  ;;  %v2506_v10 = vpop.eup %1710  ;;  %v927_v14 = vmax.f32 %v926_v55, %v2492_v52  ;;  %v2511_v57 = vmul.f32 %v1707_v24, %v2297_v58  ;;  %1728 = vpow2.f32 %v1081_v19 }
 0x174   : > { %v2513_v47 = vpop.eup %1712  ;;  %v1181_v61 = vadd.f32 %v2498_v45, %v1180_v27  ;;  %v2517_v40 = vmul.f32 %v1707_v24, %v2302_v41  ;;  %v2520_v3 = vmul.f32 %v1707_v24, %v2309_v9  ;;  %1730 = vpow2.f32 %v1085_v20 }
 0x175   : > { %v914_v30 = vmax.f32 %v913_v62, %v2490_v21  ;;  %v2522_v34 = vpop.eup %1714  ;;  %v928_v53 = vmax.f32 %v927_v14, %v2501_v26  ;;  %1732 = vrcp.f32 %v2459_v63  ;;  %v2533_v9 = vmul.f32 %v1707_v24, %v2315_v54 }
 0x176   : > { %v1182_v38 = vadd.f32 %v2506_v10, %v1181_v61  ;;  %v2538_v42 = vmul.f32 %v1707_v24, %v2321_v5  ;;  %v2541_v59 = vmul.f32 %v1707_v24, %v2329_v15  ;;  %1734 = vpow2.f32 %v1089_v22 }
 0x177   : > { %v915_v23 = vmax.f32 %v914_v30, %v2496_v17  ;;  %v2535_v19 = vpop.eup %1716  ;;  %v929_v48 = vrot.slane %v928_v53, 4  ;;  %v2547_v13 = vmul.f32 %v1707_v24, %v2341_v39  ;;  %1736 = vpow2.f32 %v1093_v36 }
 0x178   : > { %2829 = vst [vmem:[#allocation19_spill] sm:$0xff] %v2535_v19  ;;  %2830 = vst [vmem:[#allocation20_spill] sm:$0xff] %v2541_v59  ;;  %v2543_v37 = vpop.eup %1718  ;;  %v1183_v63 = vadd.f32 %v2513_v47, %v1182_v38 }
 0x179   : > { %v916_v20 = vrot.slane %v915_v23, 4  ;;  %2831 = vst [vmem:[#allocation21_spill] sm:$0xff] %v2543_v37  ;;  %2832 = vst [vmem:[#allocation22_spill] sm:$0xff] %v2547_v13  ;;  %v2549_v54 = vpop.eup %1720  ;;  %v1192_v2 = vadd.f32 %v2543_v37, %v2535_v19  ;;  %v930_v62 = vmax.f32 %v928_v53, %v929_v48  ;;  %v2839_v13 = vld [vmem:[#allocation3_spill] sm:$0xff] }
 0x17a   : > { %2833 = vst [vmem:[#allocation23_spill] sm:$0xff] %v2549_v54  ;;  %v1723_v15 = vpop.eup %1722  ;;  %v1184_v55 = vadd.f32 %v2522_v34, %v1183_v63 }
 0x17b   : > { %v917_v25 = vmax.f32 %v915_v23, %v916_v20  ;;  %v2558_v27 = vpop.eup %1724  ;;  %v1193_v39 = vadd.f32 %v2549_v54, %v1192_v2  ;;  %v931_v30 = vrot.slane %v930_v62, 2  ;;  %v2562_v14 = vmul.f32 %v1723_v15, %v2351_v43 }
 0x17c   : > { %v2564_v61 = vpop.eup %1726  ;;  %v1185_v23 = vadd.f32 %v2558_v27, %v1184_v55  ;;  %v2568_v53 = vmul.f32 %v1723_v15, %v2357_v7  ;;  %v2571_v36 = vmul.f32 %v1723_v15, %v2366_v33  ;;  %v2574_v38 = vmul.f32 %v1723_v15, %v2375_v31 }
 0x17d   : > { %v918_v24 = vrot.slane %v917_v25, 2  ;;  %2834 = vst [vmem:[#allocation24_spill] sm:$0xff] %v2564_v61  ;;  %v1194_v20 = vadd.f32 %v2564_v61, %v1193_v39  ;;  %v932_v63 = vmax.f32 %v930_v62, %v931_v30  ;;  %v2578_v43 = vmul.f32 %v1723_v15, %v2382_v49  ;;  %v2580_v2 = vpop.eup %1728 }
 0x17e   : > { %2835 = vst [vmem:[#allocation25_spill] sm:$0xff] %v2580_v2  ;;  %v1186_v22 = vrot.slane %v1185_v23, 4  ;;  %v2587_v55 = vmul.f32 %v1723_v15, %v2387_v60  ;;  %v2589_v31 = vpop.eup %1730  ;;  %v2593_v49 = vmul.f32 %v1723_v15, %v2398_v16  ;;  %v2598_v41 = vmul.f32 %v1723_v15, %v2407_v1 }
 0x17f   : > { %v919_v48 = vmax.f32 %v917_v25, %v918_v24  ;;  %2836 = vst [vmem:[#allocation26_spill] sm:$0xff] %v2589_v31  ;;  %v1195_v25 = vadd.f32 %v2580_v2, %v1194_v20  ;;  %v1733_v39 = vpop.eup %1732  ;;  %v933_v30 = vrot.slane %v932_v63, 1  ;;  %v2840_v2 = vld [vmem:[#allocation4_spill] sm:$0xff] }
 0x180   : > { %v1187_v24 = vadd.f32 %v1186_v22, %v1185_v23  ;;  %v1240_v33 = vmul.f32 %v1733_v39, %v2198_v11  ;;  %v1242_v58 = vmul.f32 %v1733_v39, %v2207_v28  ;;  %v1244_v20 = vmul.f32 %v1733_v39, %v2224_v44  ;;  %v2604_v7 = vpop.eup %1734  ;;  %v2838_v23 = vld [vmem:[#allocation6_spill] sm:$0xff] }
 0x181   : > { %v920_v62 = vrot.slane %v919_v48, 1  ;;  %v1196_v60 = vadd.f32 %v2589_v31, %v1195_v25  ;;  %v1246_v22 = vmul.f32 %v1733_v39, %v2837_v51  ;;  %v1248_v59 = vmul.f32 %v1733_v39, %v2838_v23  ;;  %v2841_v31 = vld [vmem:[#allocation5_spill] sm:$0xff]  ;;  %v2612_v61 = vpop.eup %1736 }
 0x182   : > { %v1188_v16 = vrot.slane %v1187_v24, 2  ;;  %v1250_v5 = vmul.f32 %v1733_v39, %v2839_v13  ;;  %v1304_v15 = vpack.c.bf16 %v1242_v58, %v1240_v33  ;;  %v1252_v25 = vmul.f32 %v1733_v39, %v2840_v2  ;;  %v2842_v33 = vld [vmem:[#allocation8_spill] sm:$0xff]  ;;  %v2843_v2 = vld [vmem:[#allocation7_spill] sm:$0xff] }
 0x183   : > { %v1197_v1 = vadd.f32 %v2604_v7, %v1196_v60  ;;  %v1254_v11 = vmul.f32 %v1733_v39, %v2841_v31  ;;  %v1306_v44 = vpack.c.bf16 %v1246_v22, %v1244_v20  ;;  %v921_v37 = vmax.f32 %v919_v48, %v920_v62  ;;  %v2845_v31 = vld [vmem:[#allocation9_spill] sm:$0xff] }
 0x184   : > { %v1189_v28 = vadd.f32 %v1188_v16, %v1187_v24  ;;  %v1308_v54 = vpack.c.bf16 %v1250_v5, %v1248_v59  ;;  %1383 = vmatprep.subr.bf16.mxu1 %v1304_v15  ;;  %v2615_v23 = vmax.f32 %v932_v63, %v933_v30  ;;  %v1318_v13 = vpack.c.bf16 %v2598_v41, %v2593_v49  ;;  %v2846_v24 = vld [vmem:[#allocation12_spill] sm:$0xff]  ;;  %v2847_v59 = vld [vmem:[#allocation17_spill] sm:$0xff] }
 0x185   : > { %v1198_v19 = vadd.f32 %v2612_v61, %v1197_v1  ;;  %v1310_v51 = vpack.c.bf16 %v1254_v11, %v1252_v25  ;;  %v2844_v60 = vpack.c.bf16 %v2842_v33, %v2843_v2  ;;  %v983_v39 = vsub.f32 %v2845_v31, %v921_v37  ;;  %v2848_v33 = vld [vmem:[#allocation13_spill] sm:$0xff]  ;;  %v2849_v2 = vld [vmem:[#allocation10_spill] sm:$0xff] }
 0x186   : > { %v1190_v58 = vrot.slane %v1189_v28, 1  ;;  %v985_v20 = vsub.f32 %v2846_v24, %v921_v37  ;;  %v987_v5 = vsub.f32 %v2847_v59, %v921_v37  ;;  %v989_v62 = vsub.f32 %v2419_v32, %v921_v37  ;;  %v2855_v59 = vld [vmem:[#allocation15_spill] sm:$0xff] }
 0x187   : > { %1384 = vmatpush1.bf16.msra.mxu1 %v2844_v60  ;;  %v1199_v48 = vrot.slane %v1198_v19, 4  ;;  %v991_v63 = vsub.f32 %v2463_v12, %v921_v37  ;;  %v993_v30 = vsub.f32 %v2473_v29, %v921_v37  ;;  %v995_v22 = vsub.f32 %v2490_v21, %v921_v37  ;;  %v2851_v12 = vld [vmem:[#allocation11_spill] sm:$0xff]  ;;  %v2852_v21 = vld [vmem:[#allocation14_spill] sm:$0xff] }
 0x188   : > { %1385 = vmatprep.subr.bf16.mxu1 %v1306_v44  ;;  %v1191_v16 = vadd.f32 %v1190_v58, %v1189_v28  ;;  %v997_v1 = vsub.f32 %v2496_v17, %v921_v37  ;;  %v1095_v15 = vmul.f32 1.442695, %v983_v39  ;;  %v1099_v11 = vmul.f32 1.442695, %v985_v20  ;;  %v2854_v20 = vld [vmem:[#allocation16_spill] sm:$0xff] }
 0x189   : > { %v1200_v25 = vadd.f32 %v1199_v48, %v1198_v19  ;;  %v2850_v60 = vpack.c.bf16 %v2848_v33, %v2849_v2  ;;  %v1103_v44 = vmul.f32 1.442695, %v987_v5  ;;  %v1107_v32 = vmul.f32 1.442695, %v989_v62  ;;  %v2853_v19 = vld [vmem:[#allocation18_spill] sm:$0xff] }
 0x18a   : > { %1738 = vrcp.f32 %v1191_v16  ;;  %v984_v29 = vsub.f32 %v2851_v12, %v2615_v23  ;;  %v986_v17 = vsub.f32 %v2852_v21, %v2615_v23  ;;  %v988_v37 = vsub.f32 %v2853_v19, %v2615_v23 }
 0x18b   : > { %1386 = vmatpush1.bf16.msra.mxu1 %v2850_v60  ;;  %v1201_v31 = vrot.slane %v1200_v25, 2  ;;  %1740 = vpow2.f32 %v1095_v15  ;;  %v990_v28 = vsub.f32 %v2442_v6, %v2615_v23  ;;  %v1111_v39 = vmul.f32 1.442695, %v991_v63 }
 0x18c   : > { %1387 = vmatprep.subr.bf16.mxu1 %v1308_v54  ;;  %1742 = vpow2.f32 %v1099_v11  ;;  %v992_v54 = vsub.f32 %v2465_v46, %v2615_v23  ;;  %v994_v24 = vsub.f32 %v2475_v18, %v2615_v23  ;;  %v2856_v5 = vpack.c.bf16 %v2854_v20, %v2855_v59 }
 0x18d   : > { %v1202_v58 = vadd.f32 %v1201_v31, %v1200_v25  ;;  %1744 = vpow2.f32 %v1103_v44  ;;  %v1115_v48 = vmul.f32 1.442695, %v993_v30  ;;  %v996_v62 = vsub.f32 %v2492_v52, %v2615_v23 }
 0x18e   : > { %v998_v6 = vsub.f32 %v2501_v26, %v2615_v23  ;;  %1746 = vpow2.f32 %v1107_v32  ;;  %v1097_v63 = vmul.f32 1.442695, %v984_v29  ;;  %v1101_v15 = vmul.f32 1.442695, %v986_v17 }
 0x18f   : > { %1388 = vmatpush1.bf16.msra.mxu1 %v2856_v5  ;;  %v1203_v16 = vrot.slane %v1202_v58, 1  ;;  %1748 = vpow2.f32 %v1111_v39  ;;  %v2857_v18 = vpack.c.bf16 %v2469_v35, %v2405_v8  ;;  %v1119_v25 = vmul.f32 1.442695, %v995_v22  ;;  %v2865_v39 = vld [vmem:[#allocation21_spill] sm:$0xff] }
 0x190   : > { %1389 = vmatprep.subr.bf16.mxu1 %v1310_v51  ;;  %1750 = vpow2.f32 %v1115_v48  ;;  %v1123_v30 = vmul.f32 1.442695, %v997_v1  ;;  %v1105_v11 = vmul.f32 1.442695, %v988_v37  ;;  %v2858_v52 = vpack.c.bf16 %v2568_v53, %v2562_v14  ;;  %v2868_v48 = vld [vmem:[#allocation25_spill] sm:$0xff] }
 0x191   : > { %v1204_v46 = vadd.f32 %v1203_v16, %v1202_v58  ;;  %v1109_v51 = vmul.f32 1.442695, %v990_v28  ;;  %v1113_v23 = vmul.f32 1.442695, %v992_v54  ;;  %v1117_v33 = vmul.f32 1.442695, %v994_v24 }
 0x192   : > { %v2859_v14 = vpack.c.bf16 %v2511_v57, %v2504_v0  ;;  %v2863_v37 = vpack.c.bf16 %v2538_v42, %v2533_v9  ;;  %v2864_v28 = vld [vmem:[#allocation19_spill] sm:$0xff]  ;;  %v2867_v24 = vld [vmem:[#allocation24_spill] sm:$0xff]  ;;  %v2869_v9 = vld [vmem:[#allocation26_spill] sm:$0xff] }
 0x193   : > { %1390 = vmatpush1.bf16.msra.mxu1 %v2857_v18  ;;  %1752 = vrcp.f32 %v1204_v46 }
 0x194   : > { %1391 = vmatprep.subr.bf16.mxu1 %v2858_v52  ;;  %v1739_v26 = vpop.eup %1738  ;;  %1754 = vpow2.f32 %v1097_v63  ;;  %v2871_v52 = vld [vmem:[#allocation20_spill] sm:$0xff] }
 0x195   : > { %v2658_v2 = vpop.eup %1740  ;;  %1756 = vpow2.f32 %v1101_v15  ;;  %v2661_v8 = vmul.f32 %v1739_v26, %v2471_v56  ;;  %v2664_v35 = vmul.f32 %v1739_v26, %v2477_v50  ;;  %v2667_v22 = vmul.f32 %v1739_v26, %v2486_v4 }
 0x196   : > { %v2669_v1 = vpop.eup %1742  ;;  %1758 = vpow2.f32 %v1119_v25  ;;  %v2675_v53 = vmul.f32 %v1739_v26, %v2498_v45  ;;  %v2678_v60 = vmul.f32 %v1739_v26, %v2506_v10  ;;  %v2681_v56 = vmul.f32 %v1739_v26, %v2513_v47 }
 0x197   : > { %1392 = vmatpush1.bf16.msra.mxu1 %v2859_v14  ;;  %v1205_v50 = vadd.f32 %v2669_v1, %v2658_v2  ;;  %1760 = vpow2.f32 %v1105_v11  ;;  %v2860_v4 = vpack.c.bf16 %v2574_v38, %v2571_v36  ;;  %v1319_v0 = vpack.c.bf16 %v2664_v35, %v2661_v8  ;;  %v2693_v57 = vpop.eup %1744 }
 0x198   : > { %v2691_v45 = vmul.f32 %v1739_v26, %v2522_v34  ;;  %1762 = vpow2.f32 %v1123_v30  ;;  %v1321_v10 = vpack.c.bf16 %v2675_v53, %v2667_v22  ;;  %v1323_v47 = vpack.c.bf16 %v2681_v56, %v2678_v60  ;;  %v2703_v31 = vpop.eup %1746 }
 0x199   : > { %1393 = vmatprep.subr.bf16.mxu1 %v2860_v4  ;;  %v2700_v44 = vmul.f32 %v1739_v26, %v2558_v27  ;;  %v1206_v36 = vadd.f32 %v2693_v57, %v1205_v50  ;;  %1764 = vpow2.f32 %v1109_v51  ;;  %v1121_v38 = vmul.f32 1.442695, %v996_v62  ;;  %v2710_v12 = vpop.eup %1748 }
 0x19a   : > { %v2861_v34 = vpack.c.bf16 %v2520_v3, %v2517_v40  ;;  %1766 = vpow2.f32 %v1113_v23  ;;  %v2862_v27 = vpack.c.bf16 %v2587_v55, %v2578_v43  ;;  %v2716_v21 = vpop.eup %1750  ;;  %v1125_v40 = vmul.f32 1.442695, %v998_v6  ;;  %v2866_v43 = vld [vmem:[#allocation23_spill] sm:$0xff] }
 0x19b   : > { %v1325_v32 = vpack.c.bf16 %v2700_v44, %v2691_v45  ;;  %v1207_v29 = vadd.f32 %v2703_v31, %v1206_v36  ;;  %1768 = vpow2.f32 %v1117_v33 }
 0x19c   : > { %1394 = vmatpush1.bf16.msra.mxu1 %v2861_v34  ;;  %1770 = vpow2.f32 %v1121_v38 }
 0x19d   : > { %1395 = vmatprep.subr.bf16.mxu1 %v2862_v27  ;;  %v1753_v17 = vpop.eup %1752  ;;  %v1208_v19 = vadd.f32 %v2710_v12, %v1207_v29  ;;  %1772 = vpow2.f32 %v1125_v40 }
 0x19e   : > { %v2719_v3 = vpop.eup %1754  ;;  %v1272_v58 = vmul.f32 %v1753_v17, %v2864_v28  ;;  %v1274_v54 = vmul.f32 %v1753_v17, %v2865_v39  ;;  %v1276_v55 = vmul.f32 %v1753_v17, %v2866_v43  ;;  %v1278_v20 = vmul.f32 %v1753_v17, %v2867_v24 }
 0x19f   : > { %v2728_v59 = vpop.eup %1756  ;;  %v1209_v5 = vadd.f32 %v2716_v21, %v1208_v19  ;;  %v1280_v62 = vmul.f32 %v1753_v17, %v2868_v48  ;;  %v1282_v42 = vmul.f32 %v1753_v17, %v2869_v9  ;;  %v1284_v6 = vmul.f32 %v1753_v17, %v2604_v7 }
 0x1a0   : > { %1396 = vmatpush1.bf16.msra.mxu1 %v2863_v37  ;;  %v1759_v16 = vpop.eup %1758  ;;  %v1218_v63 = vadd.f32 %v2728_v59, %v2719_v3  ;;  %v1320_v46 = vpack.c.bf16 %v1274_v54, %v1272_v58  ;;  %v1322_v15 = vpack.c.bf16 %v1278_v20, %v1276_v55  ;;  %v1286_v18 = vmul.f32 %v1753_v17, %v2612_v61 }
 0x1a1   : > { %1397 = vmatprep.subr.bf16.mxu1 %v1318_v13  ;;  %v1761_v25 = vpop.eup %1760  ;;  %v1210_v30 = vadd.f32 %v1759_v16, %v1209_v5  ;;  %v1324_v11 = vpack.c.bf16 %v1282_v42, %v1280_v62  ;;  %v2870_v13 = vld [vmem:[#allocation22_spill] sm:$0xff] }
 0x1a2   : > { %v1763_v41 = vpop.eup %1762  ;;  %v1219_v49 = vadd.f32 %v1761_v25, %v1218_v63  ;;  %v2872_v26 = vpack.c.bf16 %v2870_v13, %v2871_v52  ;;  %v1326_v51 = vpack.c.bf16 %v1286_v18, %v1284_v6  ;;  %v1633_v63 = vld [vmem:[%s2783_s3 + $0x10] ss:$8 sps:$4 sm:$0xff]  }
 0x1a3   : > { %v1765_v7 = vpop.eup %1764  ;;  %v1211_v23 = vadd.f32 %v1763_v41, %v1210_v30  ;;  %v1351_v30 = vpop.permute.xlu1 %1350 }
 0x1a4   : > { %1398 = vmatpush1.bf16.msra.mxu1 %v2872_v26  ;;  %v1220_v33 = vadd.f32 %v1765_v7, %v1219_v49  ;;  %v1767_v8 = vpop.eup %1766 }
 0x1a5   : > { %1399 = vmatprep.subr.bf16.mxu1 %v1320_v46  ;;  %v1212_v35 = vrot.slane %v1211_v23, 4  ;;  %v1769_v22 = vpop.eup %1768  ;;  %v1346_v46 = vpop.permute.xlu0 %1345 }
 0x1a6   : > { %v1221_v14 = vadd.f32 %v1767_v8, %v1220_v33  ;;  %v1771_v61 = vpop.eup %1770 }
 0x1a7   : > { %v1213_v53 = vadd.f32 %v1212_v35, %v1211_v23  ;;  %v1773_v38 = vpop.eup %1772  ;;  %v1361_v33 = vpop.permute.xlu1 %1360 }
 0x1a8   : > { %1400 = vmatpush1.bf16.msra.mxu1 %v1319_v0  ;;  %v1222_v50 = vadd.f32 %v1769_v22, %v1221_v14 }
 0x1a9   : > { %1401 = vmatprep.subr.bf16.mxu1 %v1322_v15  ;;  %v1214_v4 = vrot.slane %v1213_v53, 2  ;;  %v1356_v26 = vpop.permute.xlu0 %1355 }
 0x1aa   : > { %v1223_v36 = vadd.f32 %v1771_v61, %v1222_v50 }
 0x1ab   : > { %v1215_v34 = vadd.f32 %v1214_v4, %v1213_v53 }
 0x1ac   : > { %1402 = vmatpush1.bf16.msra.mxu1 %v1321_v10  ;;  %v1224_v29 = vadd.f32 %v1773_v38, %v1223_v36 }
 0x1ad   : > { %1403 = vmatprep.subr.bf16.mxu1 %v1324_v11  ;;  %v1216_v27 = vrot.slane %v1215_v34, 1 }
 0x1ae   : > { %v1225_v17 = vrot.slane %v1224_v29, 4 }
 0x1af   : > { %v1217_v19 = vadd.f32 %v1216_v27, %v1215_v34 }
 0x1b0   : > { %1404 = vmatpush1.bf16.msra.mxu1 %v1323_v47  ;;  %v1226_v0 = vadd.f32 %v1225_v17, %v1224_v29 }
 0x1b1   : > { %1405 = vmatprep.subr.bf16.mxu1 %v1326_v51  ;;  %1774 = vrcp.f32 %v1217_v19 }
 0x1b2   : > { %v1227_v40 = vrot.slane %v1226_v0, 2 }
 0x1b4   : > { %1406 = vmatpush1.bf16.msra.mxu1 %v1325_v32  ;;  %v1228_v10 = vadd.f32 %v1227_v40, %v1226_v0 }
 0x1b6   : > { %v1229_v37 = vrot.slane %v1228_v10, 1 }
 0x1b8   : > { %v1230_v28 = vadd.f32 %v1229_v37, %v1228_v10 }
 0x1ba   : > { %1776 = vrcp.f32 %v1230_v28 }
 0x1bb   : > { %v1775_v58 = vpop.eup %1774 }
 0x1bc   : > { %v1287_v39 = vmul.f32 %v1775_v58, %v2658_v2  ;;  %v1289_v54 = vmul.f32 %v1775_v58, %v2669_v1  ;;  %v1291_v60 = vmul.f32 %v1775_v58, %v2693_v57  ;;  %v1293_v56 = vmul.f32 %v1775_v58, %v2703_v31 }
 0x1bd   : > { %v1295_v47 = vmul.f32 %v1775_v58, %v2710_v12  ;;  %v1297_v43 = vmul.f32 %v1775_v58, %v2716_v21  ;;  %v1299_v55 = vmul.f32 %v1775_v58, %v1759_v16  ;;  %v1301_v45 = vmul.f32 %v1775_v58, %v1763_v41 }
 0x1be   : > { %v1327_v44 = vpack.c.bf16 %v1289_v54, %v1287_v39  ;;  %v1329_v32 = vpack.c.bf16 %v1293_v56, %v1291_v60 }
 0x1bf   : > { %v1331_v24 = vpack.c.bf16 %v1297_v43, %v1295_v47  ;;  %v1333_v20 = vpack.c.bf16 %v1301_v45, %v1299_v55 }
 0x1c4   : > { %v1777_v5 = vpop.eup %1776 }
 0x1c5   : > { %v1288_v48 = vmul.f32 %v1777_v5, %v2719_v3  ;;  %v1290_v2 = vmul.f32 %v1777_v5, %v2728_v59  ;;  %v1292_v1 = vmul.f32 %v1777_v5, %v1761_v25  ;;  %v1294_v62 = vmul.f32 %v1777_v5, %v1765_v7  ;;  %v1628_v3 = vld [vmem:[%s2783_s3] ss:$8 sps:$4 sm:$0xff]   ;;  %v1631_v59 = vld [vmem:[%s2783_s3 + $0x14] ss:$8 sps:$4 sm:$0xff]  }
 0x1c6   : > { %v1296_v57 = vmul.f32 %v1777_v5, %v1767_v8  ;;  %v1298_v9 = vmul.f32 %v1777_v5, %v1769_v22  ;;  %v1300_v31 = vmul.f32 %v1777_v5, %v1771_v61  ;;  %v1302_v42 = vmul.f32 %v1777_v5, %v1773_v38 }
 0x1c7   : > { %v1328_v12 = vpack.c.bf16 %v1290_v2, %v1288_v48  ;;  %v1330_v6 = vpack.c.bf16 %v1294_v62, %v1292_v1 }
 0x1c8   : > { %v1332_v21 = vpack.c.bf16 %v1298_v9, %v1296_v57  ;;  %v1334_v16 = vpack.c.bf16 %v1302_v42, %v1300_v31 }
 0x1c9   : > { %1407 = vmatprep.subr.bf16.mxu1 %v1328_v12 }
 0x1ca   : > { %1408 = vmatpush1.bf16.msra.mxu1 %v1327_v44 }
 0x1cb   : > { %1409 = vmatprep.subr.bf16.mxu1 %v1330_v6 }
 0x1ce   : > { %1410 = vmatpush1.bf16.msra.mxu1 %v1329_v32 }
 0x1cf   : > { %1411 = vmatprep.subr.bf16.mxu1 %v1332_v21 }
 0x1d2   : > { %1412 = vmatpush1.bf16.msra.mxu1 %v1331_v24 }
 0x1d3   : > { %1413 = vmatprep.subr.bf16.mxu1 %v1334_v16 }
 0x1d6   : > { %1414 = vmatpush1.bf16.msra.mxu1 %v1333_v20 }
 0x1d9   : > { %1416 = vmatmul.mubr.bf16.vlgmr.msra.gmra.mrb[0].mxu1 %v1628_v3 }
 0x1da   : > { %1425 = vmatprep.mubr.bf16.mxu1 %v1631_v59 }
 0x1e1   : > { %1426 = vmatmul.mubr.bf16.gmra.mrb[4].mxu1 %v1633_v63 }
 0x2ac   : > { %v1417_v15 = vpop.f32.mrb[0].mxu1 }
 0x2ad   : > { %v1418_v18 = vadd.f32 %v1417_v15, %v1346_v46  ;;  %v1419_v25 = vpop.f32.mrb[1].mxu1 }
 0x2ae   : > { %v1420_v11 = vadd.f32 %v1419_v25, %v1346_v46  ;;  %v1421_v41 = vpop.f32.mrb[2].mxu1 }
 0x2af   : > { %1436 = vst [vmem:[%s269_s16] sm:$0xff] %v1418_v18  ;;  %v1422_v49 = vadd.f32 %v1421_v41, %v1351_v30  ;;  %v1423_v13 = vpop.f32.mrb[3].mxu1 }
 0x2b0   : > { %1437 = vst [vmem:[%s269_s16 + $0x8] sm:$0xff] %v1420_v11  ;;  %v1424_v52 = vadd.f32 %v1423_v13, %v1351_v30 }
 0x2b1   : > { %1438 = vst [vmem:[%s269_s16 + $0x10] sm:$0xff] %v1422_v49 }
 0x2b2   : > { %1439 = vst [vmem:[%s269_s16 + $0x18] sm:$0xff] %v1424_v52 }
 0x2b4   : > { %v1427_v51 = vpop.f32.mrb[4].mxu1 }
 0x2b5   : > { %v1428_v7 = vadd.f32 %v1427_v51, %v1356_v26  ;;  %v1429_v23 = vpop.f32.mrb[5].mxu1 }
 0x2b6   : > { %v1430_v8 = vadd.f32 %v1429_v23, %v1356_v26  ;;  %v1431_v35 = vpop.f32.mrb[6].mxu1 }
 0x2b7   : > { %1440 = vst [vmem:[%s269_s16 + $0x20] sm:$0xff] %v1428_v7  ;;  %v1432_v22 = vadd.f32 %v1431_v35, %v1361_v33  ;;  %v1433_v14 = vpop.f32.mrb[7].mxu1 }
 0x2b8   : > { %1441 = vst [vmem:[%s269_s16 + $0x28] sm:$0xff] %v1430_v8  ;;  %v1434_v61 = vadd.f32 %v1433_v14, %v1361_v33 }
 0x2b9   : > { %1442 = vst [vmem:[%s269_s16 + $0x30] sm:$0xff] %v1432_v22 }
 0x2ba   : > { %1443 = vst [vmem:[%s269_s16 + $0x38] sm:$0xff] %v1434_v61 }
 0x2bb PF: > { %s15_s20 = sadd.s32 1, %s1800_s20   ;;  %s2873_s18 = smov %s1796_s19 }
 0x2bc   : > { %p12_p5 = scmp.ge.s32.totalorder %s15_s20, 4   ;;  %s2874_s19 = smov %s2876_s21 }
 0x2be   :  { %14 = sbr.rel (!%p12_p5) target bundleno = 2 (0x2), region = 70 }

</bundles_post_ra>
